<compile_context>
chip_gen: v7x
topology: tpu7x:2x2x1
jax: 0.10.0
libtpu: 0.0.40
codegen_flags: <defaults>
</compile_context>

<pallas_src>
import functools

import jax
import jax.numpy as jnp
from jax import lax
from jax.experimental import pallas as pl
from jax.experimental.pallas import tpu as pltpu

MAX_K = 10.0
POWER_ITERATIONS = 1
EPS = 1e-12
TINY = 1e-30


def _round_up(a, m):
    return ((a + m - 1) // m) * m


def _vmem_budget_bytes():
    """Per-generation VMEM budget, leaving headroom below physical capacity."""
    cap = 64 * 1024 * 1024  # conservative default (v7x per-TC VMEM)
    try:
        info = pltpu.get_tpu_info()
        cap = getattr(info, "vmem_capacity_bytes", cap) or cap
    except Exception:
        pass
    # ~75% of capacity, capped: v5e/v6e (128 MiB) -> 96 MiB, v7x (64) -> 48.
    return min(int(cap) * 3 // 4, 100 * 1024 * 1024)


def _divisor_tile(dim, target):
    """Largest tile <= target that evenly divides dim (falls back toward dim)."""
    t = min(int(target), int(dim))
    while dim % t:
        t -= 1
    return t


# ---------------------------------------------------------------------------
# Stage 1: power iteration on W^T (resident in VMEM) -> u_new, v_new, alpha
# ---------------------------------------------------------------------------
def power_iter_kernel(wt_ref, u_ref, scale_ref,
                      u_out_ref, v_out_ref, alpha_ref, *, n_iter, max_k):
    # TODO(synk): for very large W (f32 4Kx4K ~ all of v7x VMEM) tile this over
    # N with emit_pipeline or run the power iteration in plain XLA; fine for
    # typical SpectralNorm(nn.Linear) layer sizes.
    wt = wt_ref[...]                                   # (N, M) compute dtype
    u = u_ref[...]                                     # (1, M) f32
    v = jnp.zeros((wt.shape[0], 1), jnp.float32)       # (N, 1)
    u_raw = u
    for _ in range(n_iter):
        # v_ = W^T u : broadcast u across sublanes + lane reduction.  Avoids a
        # transposed-operand dot (which would force an (M,N) copy of W in VMEM).
        v_ = jnp.sum(wt * u, axis=1, keepdims=True)                     # (N, 1)
        v = v_ * lax.rsqrt(jnp.sum(v_ * v_, keepdims=True) + TINY)
        # u_ = W v : broadcast v across lanes + sublane reduction.
        u_raw = jnp.sum(wt * v, axis=0, keepdims=True)                  # (1, M)
        u = u_raw * lax.rsqrt(jnp.sum(u_raw * u_raw, keepdims=True) + TINY)

    # sigma = u . (W v) = u . u_raw (reuse the last pre-normalized W v).
    sigma = jnp.sum(u * u_raw, keepdims=True)                           # (1, 1)
    k = max_k * jax.nn.sigmoid(scale_ref[...])                          # (1, 1)
    alpha_ref[...] = k / sigma       # folded into the linear epilogue later
    u_out_ref[...] = u
    v_out_ref[...] = v


# ---------------------------------------------------------------------------
# Stage 2: tiled linear  y = alpha * (x @ W^T) + b
#   grid = (batch tiles, M tiles, K tiles); K (reduction) last.
# ---------------------------------------------------------------------------
def linear_kernel(x_ref, wt_ref, b_ref, alpha_ref, y_ref, acc_ref,
                  *, compute_dtype):
    k = pl.program_id(2)

    @pl.when(k == 0)
    def _():
        acc_ref[...] = jnp.zeros_like(acc_ref)

    # In-kernel cast: x is DMA'd once in its original dtype, cast on the VPU
    # (free under an MXU-bound step) instead of a separate wrapper XLA pass.
    x = x_ref[...].astype(compute_dtype)
    acc_ref[...] += jnp.dot(x, wt_ref[...], preferred_element_type=jnp.float32)

    @pl.when(k == pl.num_programs(2) - 1)
    def _():
        alpha = alpha_ref[0, 0]                       # scalar read from SMEM
        y = alpha * acc_ref[...] + b_ref[...].astype(jnp.float32)
        y_ref[...] = y.astype(y_ref.dtype)


def _spectral_norm_linear(x, w, b, u, scale, *,
                          n_iter=POWER_ITERATIONS, max_k=MAX_K,
                          tile_b=256, tile_n=256, tile_k=512,
                          compute_dtype=jnp.float32, out_dtype=jnp.float32):
    """SpectralNorm(nn.Linear) forward. Returns (y, u_new, v_new)."""
    # TODO(synk): PyTorch eval mode (0 power iterations, reuse stored W_sn) is
    # not implemented; this is the training-mode forward.
    assert n_iter >= 1, "n_iter must be >= 1 (sigma is undefined otherwise)"
    B, N = x.shape
    M, N2 = w.shape
    assert N2 == N
    budget = _vmem_budget_bytes()

    # W^T once per call; the cast fuses with the transpose in XLA.
    # TODO(synk): cache W^T across calls when the weight is static (inference).
    wt = jnp.transpose(w).astype(compute_dtype)           # (N, M)
    u2 = u.reshape(1, M).astype(jnp.float32)
    b2 = b.reshape(1, M).astype(jnp.float32)
    scale2 = scale.reshape(1, 1).astype(jnp.float32)

    vmem = pl.BlockSpec(memory_space=pltpu.MemorySpace.VMEM)
    smem = pl.BlockSpec(memory_space=pltpu.MemorySpace.SMEM)

    # --- Stage 1: whole-W power iteration (tiny, no grid, all resident) ----
    # The same (possibly bf16) W^T used by stage 2 feeds stage 1; norms,
    # sigma and alpha are computed in f32.
    u_new, v_new, alpha = pl.pallas_call(
        functools.partial(power_iter_kernel, n_iter=n_iter, max_k=max_k),
        out_shape=(jax.ShapeDtypeStruct((1, M), jnp.float32),
                   jax.ShapeDtypeStruct((N, 1), jnp.float32),
                   jax.ShapeDtypeStruct((1, 1), jnp.float32)),
        in_specs=[vmem, vmem, vmem],
        out_specs=(vmem, vmem, vmem),
        compiler_params=pltpu.CompilerParams(vmem_limit_bytes=budget),
    )(wt, u2, scale2)

    # --- Stage 2: tiled linear over (batch, M, K) ---------------------------
    x_bytes = x.dtype.itemsize
    w_bytes = jnp.dtype(compute_dtype).itemsize
    y_bytes = jnp.dtype(out_dtype).itemsize
    tn = _divisor_tile(M, tile_n)          # must divide M (lane-dense blocks)
    tk = _divisor_tile(N, tile_k)          # must divide N (exact reduction)
    tb = _round_up(min(int(tile_b), _round_up(B, 8)), 8)

    # VMEM budget: double-buffered x/W/bias/y blocks + f32 accumulator.
    def _need(t):
        return (2 * t * tk * x_bytes + 2 * tk * tn * w_bytes + 2 * tn * 4
                + 2 * t * tn * y_bytes + t * tn * 4)
    while tb > 8 and _need(tb) > budget:
        tb = _round_up(tb // 2, 8)

    grid = (pl.cdiv(B, tb), M // tn, N // tk)
    y = pl.pallas_call(
        functools.partial(linear_kernel, compute_dtype=compute_dtype),
        out_shape=jax.ShapeDtypeStruct((B, M), out_dtype),
        grid=grid,
        in_specs=[
            pl.BlockSpec((tb, tk), lambda i, j, k: (i, k)),   # x tile
            pl.BlockSpec((tk, tn), lambda i, j, k: (k, j)),   # W^T tile (streamed)
            pl.BlockSpec((1, tn), lambda i, j, k: (0, j)),    # bias tile
            smem,                                             # alpha scalar
        ],
        out_specs=pl.BlockSpec((tb, tn), lambda i, j, k: (i, j)),
        scratch_shapes=[pltpu.VMEM((tb, tn), jnp.float32)],
        compiler_params=pltpu.CompilerParams(
            dimension_semantics=("parallel", "parallel", "arbitrary"),
            vmem_limit_bytes=budget),
    )(x, wt, b2, alpha)

    return y, u_new.reshape(M), v_new.reshape(N)


spectral_norm_linear = jax.jit(
    _spectral_norm_linear,
    static_argnames=("n_iter", "max_k", "tile_b", "tile_n", "tile_k",
                     "compute_dtype", "out_dtype"))


# ---------------------------------------------------------------------------
# Pure-JAX reference mirroring the PyTorch SpectralNorm(nn.Linear) forward.
# ---------------------------------------------------------------------------
def reference(x, w, b, u, scale, *, n_iter=POWER_ITERATIONS, max_k=MAX_K):
    v = None
    for _ in range(n_iter):
        v_ = w.T @ u
        v = v_ / (jnp.linalg.norm(v_) + EPS)
        u_ = w @ v
        u = u_ / (jnp.linalg.norm(u_) + EPS)
    sigma = u @ (w @ v)
    k = max_k * jax.nn.sigmoid(scale[0])
    w_sn = k * w / sigma
    return x @ w_sn.T + b, u, v


if __name__ == "__main__":
    key = jax.random.PRNGKey(0)
    k_w, k_b, k_u, k_x = jax.random.split(key, 4)

    B, N, M = 48, 256, 128   # batch, in_features, out_features (small demo)

    w = jax.random.normal(k_w, (M, N), jnp.float32) * 0.1   # nn.Linear weight (out, in)
    b = jax.random.normal(k_b, (M,), jnp.float32) * 0.1     # nn.Linear bias
    u = jax.random.normal(k_u, (M,), jnp.float32)
    u = u / (jnp.linalg.norm(u) + EPS)                      # buffer weight_u
    scale = jnp.zeros((1,), jnp.float32)                    # self.scale = zeros(1)
    x = jax.random.normal(k_x, (B, N), jnp.float32)

    y_ref, u_ref_, v_ref_ = reference(x, w, b, u, scale)

    # f32 path: small batch tiles + split K to exercise the accumulator grid
    # (grid = (2, 1, 2), last batch block partial).
    y, u_new, v_new = spectral_norm_linear(
        x, w, b, u, scale, tile_b=32, tile_n=128, tile_k=128)
    jax.block_until_ready((y, u_new, v_new))
    assert jnp.allclose(y, y_ref, atol=1e-4, rtol=1e-4), "y mismatch (f32)"
    assert jnp.allclose(u_new, u_ref_, atol=1e-5, rtol=1e-5), "u mismatch"
    assert jnp.allclose(v_new, v_ref_, atol=1e-5, rtol=1e-5), "v mismatch"

    # bf16 weight/matmul path (MXU-native on v6e/v7x); default tiles.
    y_bf16, _, _ = spectral_norm_linear(
        x, w, b, u, scale, compute_dtype=jnp.bfloat16)
    jax.block_until_ready(y_bf16)
    assert jnp.allclose(y_bf16, y_ref, atol=5e-2, rtol=5e-2), "y mismatch (bf16)"

    print("KERNEL_OK")
</pallas_src>

<mosaic_0001>
module attributes {stable_mosaic.version = 11 : i64} {
  func.func @power_iter_kernel(%arg0: memref<256x128xf32, #tpu.memory_space<vmem>>, %arg1: memref<1x128xf32, #tpu.memory_space<vmem>>, %arg2: memref<1x1xf32, #tpu.memory_space<vmem>>, %arg3: memref<1x128xf32, #tpu.memory_space<vmem>>, %arg4: memref<256x1xf32, #tpu.memory_space<vmem>>, %arg5: memref<1x1xf32, #tpu.memory_space<vmem>>) attributes {dimension_semantics = [], scalar_prefetch = 0 : i64, scratch_operands = 0 : i64, tpu.core_type = #tpu.core_type<tc>} {
    %c0 = arith.constant 0 : index
    %c0_0 = arith.constant 0 : index
    %0 = vector.load %arg0[%c0, %c0_0] : memref<256x128xf32, #tpu.memory_space<vmem>>, vector<256x128xf32>
    %c0_1 = arith.constant 0 : index
    %c0_2 = arith.constant 0 : index
    %1 = vector.load %arg1[%c0_1, %c0_2] : memref<1x128xf32, #tpu.memory_space<vmem>>, vector<1x128xf32>
    %2 = vector.broadcast %1 : vector<1x128xf32> to vector<256x128xf32>
    %3 = arith.mulf %0, %2 : vector<256x128xf32>
    %cst = arith.constant dense<0.000000e+00> : vector<256xf32>
    %4 = vector.multi_reduction <add>, %3, %cst [1] : vector<256x128xf32> to vector<256xf32>
    %5 = vector.shape_cast %4 : vector<256xf32> to vector<256x1xf32>
    %6 = arith.mulf %5, %5 : vector<256x1xf32>
    %7 = vector.shape_cast %6 : vector<256x1xf32> to vector<1x256x1xf32>
    %cst_3 = arith.constant dense<0.000000e+00> : vector<1xf32>
    %8 = vector.multi_reduction <add>, %7, %cst_3 [1, 2] : vector<1x256x1xf32> to vector<1xf32>
    %9 = vector.shape_cast %8 : vector<1xf32> to vector<1x1x1xf32>
    %10 = vector.extract %9[0, 0, 0] : f32 from vector<1x1x1xf32>
    %11 = vector.broadcast %10 : f32 to vector<1x1xf32>
    %cst_4 = arith.constant 1.000000e-30 : f32
    %12 = vector.broadcast %cst_4 : f32 to vector<1x1xf32>
    %13 = arith.addf %11, %12 : vector<1x1xf32>
    %14 = math.rsqrt %13 : vector<1x1xf32>
    %15 = vector.broadcast %14 : vector<1x1xf32> to vector<256x1xf32>
    %16 = arith.mulf %5, %15 : vector<256x1xf32>
    %17 = vector.broadcast %16 : vector<256x1xf32> to vector<256x128xf32>
    %18 = arith.mulf %0, %17 : vector<256x128xf32>
    %cst_5 = arith.constant dense<0.000000e+00> : vector<128xf32>
    %19 = vector.multi_reduction <add>, %18, %cst_5 [0] : vector<256x128xf32> to vector<128xf32>
    %20 = vector.shape_cast %19 : vector<128xf32> to vector<1x128xf32>
    %21 = arith.mulf %20, %20 : vector<1x128xf32>
    %22 = vector.shape_cast %21 : vector<1x128xf32> to vector<1x1x128xf32>
    %cst_6 = arith.constant dense<0.000000e+00> : vector<1xf32>
    %23 = vector.multi_reduction <add>, %22, %cst_6 [1, 2] : vector<1x1x128xf32> to vector<1xf32>
    %24 = vector.shape_cast %23 : vector<1xf32> to vector<1x1x1xf32>
    %25 = vector.extract %24[0, 0, 0] : f32 from vector<1x1x1xf32>
    %26 = vector.broadcast %25 : f32 to vector<1x1xf32>
    %cst_7 = arith.constant 1.000000e-30 : f32
    %27 = vector.broadcast %cst_7 : f32 to vector<1x1xf32>
    %28 = arith.addf %26, %27 : vector<1x1xf32>
    %29 = math.rsqrt %28 : vector<1x1xf32>
    %30 = vector.broadcast %29 : vector<1x1xf32> to vector<1x128xf32>
    %31 = arith.mulf %20, %30 : vector<1x128xf32>
    %32 = arith.mulf %31, %20 : vector<1x128xf32>
    %33 = vector.shape_cast %32 : vector<1x128xf32> to vector<1x1x128xf32>
    %cst_8 = arith.constant dense<0.000000e+00> : vector<1xf32>
    %34 = vector.multi_reduction <add>, %33, %cst_8 [1, 2] : vector<1x1x128xf32> to vector<1xf32>
    %35 = vector.shape_cast %34 : vector<1xf32> to vector<1x1x1xf32>
    %36 = vector.extract %35[0, 0, 0] : f32 from vector<1x1x1xf32>
    %37 = vector.broadcast %36 : f32 to vector<1x1xf32>
    %c0_9 = arith.constant 0 : index
    %c0_10 = arith.constant 0 : index
    %38 = vector.load %arg2[%c0_9, %c0_10] : memref<1x1xf32, #tpu.memory_space<vmem>>, vector<1x1xf32>
    %39 = arith.negf %38 : vector<1x1xf32>
    %40 = math.exp %39 : vector<1x1xf32>
    %cst_11 = arith.constant 1.000000e+00 : f32
    %41 = vector.broadcast %cst_11 : f32 to vector<1x1xf32>
    %42 = arith.addf %41, %40 : vector<1x1xf32>
    %43 = arith.divf %41, %42 : vector<1x1xf32>
    %cst_12 = arith.constant 1.000000e+01 : f32
    %44 = vector.broadcast %cst_12 : f32 to vector<1x1xf32>
    %45 = arith.mulf %44, %43 : vector<1x1xf32>
    %46 = arith.divf %45, %37 : vector<1x1xf32>
    %c0_13 = arith.constant 0 : index
    %c0_14 = arith.constant 0 : index
    %47 = vector.load %arg5[%c0_13, %c0_14] : memref<1x1xf32, #tpu.memory_space<vmem>>, vector<1x1xf32>
    tpu.vector_store %arg5[%c0_13, %c0_14], %46 {strides = array<i32>} : memref<1x1xf32, #tpu.memory_space<vmem>>, vector<1x1xf32>,
    %c0_15 = arith.constant 0 : index
    %c0_16 = arith.constant 0 : index
    %48 = vector.load %arg3[%c0_15, %c0_16] : memref<1x128xf32, #tpu.memory_space<vmem>>, vector<1x128xf32>
    tpu.vector_store %arg3[%c0_15, %c0_16], %31 {strides = array<i32>} : memref<1x128xf32, #tpu.memory_space<vmem>>, vector<1x128xf32>,
    %c0_17 = arith.constant 0 : index
    %c0_18 = arith.constant 0 : index
    %49 = vector.load %arg4[%c0_17, %c0_18] : memref<256x1xf32, #tpu.memory_space<vmem>>, vector<256x1xf32>
    tpu.vector_store %arg4[%c0_17, %c0_18], %16 {strides = array<i32>} : memref<256x1xf32, #tpu.memory_space<vmem>>, vector<256x1xf32>,
    return
  }
}

module attributes {stable_mosaic.version = 11 : i64} {
  func.func @linear_kernel(%arg0: i32, %arg1: i32, %arg2: i32, %arg3: memref<32x128xf32, #tpu.memory_space<vmem>>, %arg4: memref<128x128xf32, #tpu.memory_space<vmem>>, %arg5: memref<1x128xf32, #tpu.memory_space<vmem>>, %arg6: memref<1x1xf32, #tpu.memory_space<smem>>, %arg7: memref<32x128xf32, #tpu.memory_space<vmem>>, %arg8: memref<32x128xf32, #tpu.memory_space<vmem>>) attributes {dimension_semantics = [#tpu.dimension_semantics<parallel>, #tpu.dimension_semantics<parallel>, #tpu.dimension_semantics<arbitrary>], iteration_bounds = array<i64: 2, 1, 2>, scalar_prefetch = 0 : i64, scratch_operands = 1 : i64, tpu.core_type = #tpu.core_type<tc>, window_params = [{transform_indices = @transform_0, window_bounds = array<i64: 32, 128>}, {transform_indices = @transform_1, window_bounds = array<i64: 128, 128>}, {transform_indices = @transform_2, window_bounds = array<i64: 1, 128>}, {transform_indices = @transform_3, window_bounds = array<i64: 1, 1>}, {transform_indices = @transform_4, window_bounds = array<i64: 32, 128>}]} {
    %c0_i32 = arith.constant 0 : i32
    %0 = arith.cmpi eq, %arg2, %c0_i32 : i32
    %1 = arith.extui %0 : i1 to i32
    %c0_i32_0 = arith.constant 0 : i32
    %2 = arith.cmpi ne, %1, %c0_i32_0 : i32
    scf.if %2 {
      %cst_9 = arith.constant 0.000000e+00 : f32
      %12 = vector.broadcast %cst_9 : f32 to vector<32x128xf32>
      %c0_10 = arith.constant 0 : index
      %c0_11 = arith.constant 0 : index
      %13 = vector.load %arg8[%c0_10, %c0_11] : memref<32x128xf32, #tpu.memory_space<vmem>>, vector<32x128xf32>
      tpu.vector_store %arg8[%c0_10, %c0_11], %12 {strides = array<i32>} : memref<32x128xf32, #tpu.memory_space<vmem>>, vector<32x128xf32>,
    } else {
    }
    %c0 = arith.constant 0 : index
    %c0_1 = arith.constant 0 : index
    %3 = vector.load %arg3[%c0, %c0_1] : memref<32x128xf32, #tpu.memory_space<vmem>>, vector<32x128xf32>
    %c0_2 = arith.constant 0 : index
    %c0_3 = arith.constant 0 : index
    %4 = vector.load %arg8[%c0_2, %c0_3] : memref<32x128xf32, #tpu.memory_space<vmem>>, vector<32x128xf32>
    %c0_4 = arith.constant 0 : index
    %c0_5 = arith.constant 0 : index
    %5 = vector.load %arg4[%c0_4, %c0_5] : memref<128x128xf32, #tpu.memory_space<vmem>>, vector<128x128xf32>
    %cst = arith.constant dense<0.000000e+00> : vector<32x128xf32>
    %6 = tpu.matmul %3, %5, %cst {dimension_numbers = #tpu.dot_dimension_numbers<[1], [0], [0], [1], [0, 0, 1, 1], [], []>} : vector<32x128xf32>, vector<128x128xf32>, vector<32x128xf32> -> vector<32x128xf32>
    %7 = arith.addf %4, %6 : vector<32x128xf32>
    %c0_6 = arith.constant 0 : index
    %c0_7 = arith.constant 0 : index
    %8 = vector.load %arg8[%c0_6, %c0_7] : memref<32x128xf32, #tpu.memory_space<vmem>>, vector<32x128xf32>
    tpu.vector_store %arg8[%c0_6, %c0_7], %7 {strides = array<i32>} : memref<32x128xf32, #tpu.memory_space<vmem>>, vector<32x128xf32>,
    %c1_i32 = arith.constant 1 : i32
    %9 = arith.cmpi eq, %arg2, %c1_i32 : i32
    %10 = arith.extui %9 : i1 to i32
    %c0_i32_8 = arith.constant 0 : i32
    %11 = arith.cmpi ne, %10, %c0_i32_8 : i32
    scf.if %11 {
      %c0_9 = arith.constant 0 : index
      %c0_10 = arith.constant 0 : index
      %12 = memref.load %arg6[%c0_9, %c0_10] : memref<1x1xf32, #tpu.memory_space<smem>>
      %c0_11 = arith.constant 0 : index
      %c0_12 = arith.constant 0 : index
      %13 = vector.load %arg8[%c0_11, %c0_12] : memref<32x128xf32, #tpu.memory_space<vmem>>, vector<32x128xf32>
      %14 = vector.broadcast %12 : f32 to vector<32x128xf32>
      %15 = arith.mulf %14, %13 : vector<32x128xf32>
      %c0_13 = arith.constant 0 : index
      %c0_14 = arith.constant 0 : index
      %16 = vector.load %arg5[%c0_13, %c0_14] : memref<1x128xf32, #tpu.memory_space<vmem>>, vector<1x128xf32>
      %17 = vector.broadcast %16 : vector<1x128xf32> to vector<32x128xf32>
      %18 = arith.addf %15, %17 : vector<32x128xf32>
      %c0_15 = arith.constant 0 : index
      %c0_16 = arith.constant 0 : index
      %19 = vector.load %arg7[%c0_15, %c0_16] : memref<32x128xf32, #tpu.memory_space<vmem>>, vector<32x128xf32>
      tpu.vector_store %arg7[%c0_15, %c0_16], %18 {strides = array<i32>} : memref<32x128xf32, #tpu.memory_space<vmem>>, vector<32x128xf32>,
    } else {
    }
    return
  }
  func.func @transform_0(%arg0: i32, %arg1: i32, %arg2: i32) -> (i32, i32) {
    %c0_i32 = arith.constant 0 : i32
    return %arg0, %arg2 : i32, i32
  }
  func.func @transform_1(%arg0: i32, %arg1: i32, %arg2: i32) -> (i32, i32) {
    %c0_i32 = arith.constant 0 : i32
    return %arg2, %arg1 : i32, i32
  }
  func.func @transform_2(%arg0: i32, %arg1: i32, %arg2: i32) -> (i32, i32) {
    %c0_i32 = arith.constant 0 : i32
    %c0_i32_0 = arith.constant 0 : i32
    return %c0_i32, %arg1 : i32, i32
  }
  func.func @transform_3(%arg0: i32, %arg1: i32, %arg2: i32) -> (i32, i32) {
    %c0_i32 = arith.constant 0 : i32
    %c0_i32_0 = arith.constant 0 : i32
    %c0_i32_1 = arith.constant 0 : i32
    return %c0_i32, %c0_i32_0 : i32, i32
  }
  func.func @transform_4(%arg0: i32, %arg1: i32, %arg2: i32) -> (i32, i32) {
    %c0_i32 = arith.constant 0 : i32
    return %arg0, %arg1 : i32, i32
  }
}

</mosaic_0001>

<bundles_post_ra>
// kernel: _spectral_norm_linear.3
= control target key start
LH: loop header
LB: loop body
LE: loop exit
PB: predicated region body
PF: predicated region fallthrough
CT: control target
= control target key end

     0   :  { %s1521_s0 = inlined_call_operand.vmem [shape: f32[48,256], index: 0, kind: input, shape index: {}]   ;;  %s1522_s1 = inlined_call_operand.vmem [shape: f32[256,128], index: 1, kind: input, shape index: {}]   ;;  %s1523_s2 = inlined_call_operand.vmem [shape: f32[1,128], index: 2, kind: input, shape index: {}]   ;;  %s1524_s3 = inlined_call_operand.<no memory space> [shape: f32[1,1], index: 3, kind: input, shape index: {}]   ;;  %s1525_s4 = inlined_call_operand.hbm [shape: f32[48,128], index: 4, kind: output, shape index: {}]  }
   0x1   :  { %1529 = sst [smem:[#allocation11_spill]] %s1521_s0 }
   0x2   :  { %9 = sst [smem:[#allocation3]] %s1524_s3 }
   0x3   :  { %10 = vsyncpa [#allocation6], 0 }
   0x4   :  { %12 = vsyncpa [#allocation6 + $0x1], 0  ;;  %s1245_s17 = smov 0   ;;  %s1247_s18 = smov 0  }
   0x5   :  { %s1249_s19 = smov 0   ;;  %s1251_s20 = smov 0  }
   0x6   :  { %s1253_s21 = smov 0   ;;  %s1255_s22 = smov 0  }
   0x7   :  { %s1257_s23 = smov 0   ;;  %s1259_s24 = smov 0  }
   0x8   :  { %s1261_s25 = smov 0   ;;  %s1263_s3 = smov 0  }
   0x9 LB: > { %1530 = sst [smem:[#allocation8_spill]] %s1175_s25  ;;  %s736_s26 = sadd.s32 4294967295, %s1179_s3   ;;  %s1179_s3 = sphi %s1263_s3, %s18_s3   ;;  %s1175_s25 = sphi %s1261_s25, %s1550_s25   ;;  %s1171_s24 = sphi %s1259_s24, %s1549_s24   ;;  %s1167_s23 = sphi %s1257_s23, %s1540_s23   ;;  %s1163_s22 = sphi %s1255_s22, %s1548_s22   ;;  %s1159_s21 = sphi %s1253_s21, %s1547_s21   ;;  %s1155_s20 = sphi %s1251_s20, %s1546_s20   ;;  %s1151_s19 = sphi %s1249_s19, %s1545_s19   ;;  %s1147_s18 = sphi %s1247_s18, %s1544_s18   ;;  %s1143_s17 = sphi %s1245_s17, %s1543_s17  }
   0xa   : > { %s737_s27 = sadd.s32 4294967294, %s1179_s3   ;;  %s30_s28 = sadd.s32 1, %s1171_s24 }
   0xb   : > { %s37_s29 = sadd.s32 1, %s1175_s25  ;;  %p31_p0 = scmp.ge.s32.totalorder %s30_s28, 2 }
   0xc   : > { %s46_s30 = sadd.s32 1, %s1159_s21  ;;  %p53_p1 = scmp.ne.s32.totalorder %s1159_s21, %s1155_s20 }
   0xd   : > { %p54_p2 = scmp.eq.s32.totalorder %s1179_s3, 0  ;;  %s1552_s28 = smov (%p31_p0, %s30_s28), 0 }
   0xe   : > { %1531 = sst [smem:[#allocation9_spill]] %s1552_s28  ;;  %s1554_s29 = smov (!%p31_p0, %s37_s29), %s1175_s25 }
   0xf   : > { %s42_s5 = ssub.s32 %s1171_s24, %s1552_s28  ;;  %p1308_p3 = por %p54_p2, %p53_p1 }
  0x10   : > { %p39_p4 = scmp.ge.s32.totalorder %s1554_s29, 2  ;;  %s149_s7 = sadd.s32 1, %s1151_s19 }
  0x11   : > { %p159_p5 = scmp.ne.s32.totalorder %s1151_s19, %s1147_s18  ;;  %p160_p6 = scmp.eq.s32.totalorder %s736_s26, 3 }
  0x12   : > { %s1556_s29 = smov (%p39_p4, %s1554_s29), 0  ;;  %p165_p8 = scmp.ne.s32.totalorder %s1147_s18, %s1143_s17 }
  0x13   : > { %1533 = sst [smem:[#allocation10_spill]] %s1556_s29  ;;  %p1317_p7 = por %p160_p6, %p159_p5 }
  0x14   : > { %s41_s9 = ssub.s32 %s1175_s25, %s1556_s29  ;;  %p166_p9 = scmp.eq.s32.totalorder %s737_s27, 3 }
  0x15   : > { %s43_s10 = sor.u32 %s42_s5, %s41_s9  ;;  %p147_p10 = scmp.eq.s32.totalorder %s41_s9, 0 }
  0x16   : > { %p44_p11 = scmp.eq.s32.totalorder %s43_s10, 0  ;;  %p1325_p12 = por %p166_p9, %p165_p8 }
  0x17   : > { %s1330_s12 = scalar_select %p147_p10, %s1151_s19, %s149_s7  }
  0x18   : > { %s1333_s13 = scalar_select %p44_p11, %s1159_s21, %s46_s30  }
  0x19   : > { %p740_p13 = scmp.ge.s32.totalorder %s1179_s3, 4 }
  0x1b   : > { %191 = sbr.rel (%p740_p13) target bundleno = 90 (0x5a), region = 24 }
  0x22   : > { %194 = sbr.rel (!%p1308_p3) target bundleno = 90 (0x5a), region = 28  ;;  %s196_s14 = sand.u32 (%p1308_p3), 1, %s1159_s21  }
  0x23   : > { %s742_s15 = sshll.u32 (%p1308_p3), %s1175_s25, 2  ;;  %s741_s16 = sshll.u32 (%p1308_p3), %s196_s14, 5 }
  0x24   : > { %s200_s26 = ssub.s32 (%p1308_p3), 6, %s742_s15  ;;  %s774_s27 = sshll.u32 (%p1308_p3), %s1175_s25, 3 }
  0x25   : > { %p201_p0 = scmp.lt.s32.totalorder (%p1308_p3), %s200_s26, 4  ;;  %s206_s30 = sadd.s32 (%p1308_p3), %s1171_s24, %s774_s27 }
  0x26   : > { %s746_s7 = sshll.u32 (%p1308_p3), %s206_s30, 3  ;;  %s1536_s0 = sld [smem:[#allocation11_spill]] (%p1308_p3) }
  0x27   : > { %s1350_s29 = scalar_lea.vmem (%p1308_p3), [#allocation4], %s741_s16  }
  0x29   : > { %s1558_s26 = smov (!%p201_p0, %s200_s26), 4 }
  0x2a   : > { %s743_s5 = sshll.u32 %s1558_s26, 7 }
  0x2b   : > { %p747_p1 = scmp.eq.s32.totalorder %s743_s5, 0 }
  0x2c   : > { %s1348_s6 = scalar_lea.vmem %s1536_s0, %s746_s7   ;;  %s1353_s14 = sshrl.u32 (!%p747_p1), %s1558_s26, 2 }
  0x2d   : > { %211 = sbr.rel (%p747_p1) target bundleno = 90 (0x5a), region = 32  ;;  %p748_p2 = scmp.le.s32.totalorder (!%p747_p1), %s1353_s14, 0 }
  0x34   : > { %663 = sbr.rel (%p748_p2) target bundleno = 69 (0x45), region = 144  ;;  %s1537_s15 = smov (!%p748_p2), %s1350_s29 }
  0x35   : > { %s1538_s27 = smov (!%p748_p2), %s1348_s6  ;;  %s1362_s30 = smov (!%p748_p2), 0  }
  0x36   : > { %s1364_s7 = smov (!%p748_p2), 0  }
  0x3b LB: >> { %v279_v0 = vld [vmem:[%s1187_s27] sm:$0xff]  ;;  %v281_v1 = vld [vmem:[%s1187_s27 + $0x10] sm:$0xff]  ;;  %s287_s16 = sadd.s32 1, %s1191_s30  ;;  %s273_s7 = sadd.s32 1, %s1195_s7   ;;  %s1195_s7 = sphi %s1364_s7, %s273_s7   ;;  %s1191_s30 = sphi %s1362_s30, %s1539_s30   ;;  %s1187_s27 = sphi %s1538_s27, %s292_s27   ;;  %s1183_s15 = sphi %s1537_s15, %s293_s15  }
  0x3c   : >> { %v283_v2 = vld [vmem:[%s1187_s27 + $0x20] sm:$0xff]  ;;  %280 = vst [vmem:[%s1183_s15] sm:$0xff] %v279_v0  ;;  %282 = vst [vmem:[%s1183_s15 + $0x8] sm:$0xff] %v281_v1  ;;  %v285_v3 = vld [vmem:[%s1187_s27 + $0x30] sm:$0xff]  ;;  %p288_p3 = scmp.ge.s32.totalorder %s287_s16, %s1353_s14  ;;  %p272_p4 = scmp.ge.s32.totalorder %s273_s7, %s1353_s14 }
  0x3d   : >> { %284 = vst [vmem:[%s1183_s15 + $0x10] sm:$0xff] %v283_v2  ;;  %286 = vst [vmem:[%s1183_s15 + $0x18] sm:$0xff] %v285_v3 }
  0x3e   : >> { %s1560_s16 = smov (%p288_p3, %s287_s16), 0  ;;  %275 = sbr.rel (!%p272_p4) target bundleno = 59 (0x3b), region = 150 }
  0x3f   : >> { %s749_s5 = sshll.u32 %s1560_s16, 6  ;;  %s750_s9 = sshll.u32 %s1560_s16, 5 }
  0x40   : >> { %s292_s27 = scalar_lea.vmem %s1348_s6, %s749_s5   ;;  %s293_s15 = scalar_lea.vmem %s1350_s29, %s750_s9 [#allocation4]  }
  0x41   : >> { %s1539_s30 = smov %s1560_s16 }
  0x45 PF: > { %s1383_s10 = sand.u32 3, %s1558_s26   ;;  %s775_s5 = sshll.u32 %s1353_s14, 6 }
  0x46   : > { %s1387_s9 = scalar_lea.vmem %s1348_s6, %s775_s5   ;;  %s776_s0 = sshll.u32 %s1353_s14, 5 }
  0x47   : > { %s300_s28 = scalar_lea.vmem %s1350_s29, %s776_s0 [#allocation4]   ;;  %p754_p5 = scmp.le.s32.totalorder %s1383_s10, 0 }
  0x48   : > { %s1197_s16 = smov (!%p754_p5), %s300_s28   ;;  %s1201_s7 = smov (!%p754_p5), %s1387_s9  }
  0x49   : > { %677 = sbr.rel (%p754_p5) target bundleno = 90 (0x5a), region = 155  ;;  %s1205_s25 = smov (!%p754_p5), 0  }
  0x4a   : > { %s1209_s15 = smov (!%p754_p5), 0  }
  0x50 LB: >> { %v310_v4 = vld [vmem:[%s1203_s7] sm:$0xff]  ;;  %s312_s26 = sadd.s32 1, %s1207_s25  ;;  %s304_s15 = sadd.s32 1, %s1211_s15   ;;  %s1211_s15 = sphi %s1209_s15, %s304_s15   ;;  %s1207_s25 = sphi %s1205_s25, %s1206_s25   ;;  %s1203_s7 = sphi %s1201_s7, %s317_s7   ;;  %s1199_s16 = sphi %s1197_s16, %s318_s16  }
  0x51   : >> { %311 = vst [vmem:[%s1199_s16] sm:$0xff] %v310_v4  ;;  %p313_p6 = scmp.ge.s32.totalorder %s312_s26, %s1383_s10  ;;  %p303_p8 = scmp.ge.s32.totalorder %s304_s15, %s1383_s10 }
  0x53   : >> { %s1562_s26 = smov (%p313_p6, %s312_s26), 0  ;;  %306 = sbr.rel (!%p303_p8) target bundleno = 80 (0x50), region = 161 }
  0x54   : >> { %s755_s0 = sshll.u32 %s1562_s26, 4  ;;  %s756_s29 = sshll.u32 %s1562_s26, 3 }
  0x55   : >> { %s317_s7 = scalar_lea.vmem %s1387_s9, %s755_s0   ;;  %s318_s16 = scalar_lea.vmem %s300_s28, %s756_s29 [#allocation4]  }
  0x56   : >> { %s1206_s25 = smov %s1562_s26  }
  0x5a PF: > { %p757_p9 = scmp.ge.s32.totalorder %s1179_s3, 1  ;;  %p335_p10 = scmp.lt.s32.totalorder %s1179_s3, 5 }
  0x5c   : > { %p336_p11 = pnand %p757_p9, %p335_p10 }
  0x5d   : > { %s342_s25 = sand.u32 (!%p336_p11), 1, %s1155_s20   ;;  %s375_s6 = sand.u32 (!%p336_p11), 1, %s1147_s18  }
  0x5e   : > { %339 = sbr.rel (%p336_p11) target bundleno = 406 (0x196), region = 84  ;;  %s758_s14 = sshll.u32 (!%p336_p11), %s342_s25, 5 }
  0x5f   : > { %s759_s27 = sshll.u32 (!%p336_p11), %s375_s6, 5  ;;  %s760_s30 = sshll.u32 (!%p336_p11), %s1163_s22, 4 }
  0x60   : > { %p384_p13 = scmp.lt.s32.totalorder (!%p336_p11), %s760_s30, 31  ;;  %s1408_s16 = scalar_lea.vmem (!%p336_p11), [#allocation4], %s758_s14 }
  0x61   : > { %s1410_s7 = scalar_lea.vmem (!%p336_p11), [#allocation5], %s759_s27  ;;  %p762_p0 = scmp.ne.s32.totalorder (!%p336_p11), %s1163_s22, 0 }
  0x65   : > { %s1564_s30 = smov (!%p384_p13, %s760_s30), 31  ;;  %403 = sbr.rel (%p762_p0) target bundleno = 108 (0x6c), region = 92 }
  0x66   : > { %s761_s28 = sshll.u32 %s1564_s30, 3  ;;  %v1213_v5 = vmov (!%p762_p0), 0.0  }
  0x67   : > { %s1406_s9 = scalar_lea.vmem %s1522_s1, %s761_s28  ;;  %404 = vst [vmem:[#allocation2] sm:$0xff] (!%p762_p0), %v1213_v5  ;;  %405 = vst [vmem:[#allocation2 + $0x8] sm:$0xff] (!%p762_p0), %v1213_v5 }
  0x68   : > { %406 = vst [vmem:[#allocation2 + $0x10] sm:$0xff] (!%p762_p0), %v1213_v5  ;;  %407 = vst [vmem:[#allocation2 + $0x18] sm:$0xff] (!%p762_p0), %v1213_v5 }
  0x6c PF: > { %v416_v6 = vld [vmem:[%s1406_s9] sm:$0xff]  ;;  %v417_v7 = vld [vmem:[%s1406_s9 + $0x8] sm:$0xff]  ;;  %v418_v8 = vld [vmem:[%s1406_s9 + $0x10] sm:$0xff]  ;;  %p763_p1 = scmp.ne.s32.totalorder %s1163_s22, 1 }
  0x6d   : > { %v836_v9 = vpack.c.bf16 %v417_v7, %v416_v6  ;;  %v419_v10 = vld [vmem:[%s1406_s9 + $0x18] sm:$0xff]  ;;  %v420_v12 = vld [vmem:[%s1406_s9 + $0x20] sm:$0xff]  ;;  %v421_v13 = vld [vmem:[%s1406_s9 + $0x28] sm:$0xff]  ;;  %s529_s20 = sld [smem:[#allocation3]] (!%p763_p1) }
  0x6e   : > { %v840_v11 = vpack.c.bf16 %v419_v10, %v418_v8  ;;  %v844_v14 = vpack.c.bf16 %v421_v13, %v420_v12  ;;  %v408_v15 = vld [vmem:[%s1408_s16] sm:$0xff]  ;;  %v410_v16 = vld [vmem:[%s1408_s16 + $0x10] sm:$0xff]  ;;  %v423_v18 = vld [vmem:[%s1406_s9 + $0x38] sm:$0xff] }
  0x6f   : > { %837 = vmatprep.subr.bf16.mxu0 %v836_v9  ;;  %868 = vmatprep.subr.bf16.mxu1 %v836_v9  ;;  %v422_v17 = vld [vmem:[%s1406_s9 + $0x30] sm:$0xff]  ;;  %v424_v20 = vld [vmem:[%s1406_s9 + $0x40] sm:$0xff]  ;;  %v425_v21 = vld [vmem:[%s1406_s9 + $0x48] sm:$0xff] }
  0x70   : > { %839 = vmatpush3.bf16.msra.mxu0 %v836_v9  ;;  %876 = vmatpush3.bf16.msra.mxu1 %v836_v9  ;;  %v848_v19 = vpack.c.bf16 %v423_v18, %v422_v17  ;;  %v852_v22 = vpack.c.bf16 %v425_v21, %v424_v20  ;;  %v426_v23 = vld [vmem:[%s1406_s9 + $0x50] sm:$0xff]  ;;  %v427_v24 = vld [vmem:[%s1406_s9 + $0x58] sm:$0xff]  ;;  %v428_v26 = vld [vmem:[%s1406_s9 + $0x60] sm:$0xff] }
  0x71   : > { %841 = vmatprep.subr.bf16.mxu0 %v840_v11  ;;  %869 = vmatprep.subr.bf16.mxu1 %v840_v11  ;;  %v856_v25 = vpack.c.bf16 %v427_v24, %v426_v23  ;;  %v429_v27 = vld [vmem:[%s1406_s9 + $0x68] sm:$0xff]  ;;  %v430_v29 = vld [vmem:[%s1406_s9 + $0x70] sm:$0xff]  ;;  %v431_v30 = vld [vmem:[%s1406_s9 + $0x78] sm:$0xff] }
  0x72   : > { %830 = vmatprep.mubr.f32.mxu0 %v408_v15  ;;  %833 = vmatprep.mubr.f32.mxu1 %v410_v16  ;;  %v860_v28 = vpack.c.bf16 %v429_v27, %v428_v26  ;;  %v864_v31 = vpack.c.bf16 %v431_v30, %v430_v29  ;;  %v409_v32 = vld [vmem:[%s1408_s16 + $0x8] sm:$0xff]  ;;  %v411_v33 = vld [vmem:[%s1408_s16 + $0x18] sm:$0xff]  ;;  %v412_v36 = vld [vmem:[#allocation2] sm:$0xff] }
  0x73   : > { %v413_v34 = vld [vmem:[#allocation2 + $0x8] sm:$0xff]  ;;  %v415_v35 = vld [vmem:[#allocation2 + $0x18] sm:$0xff]  ;;  %v414_v37 = vld [vmem:[#allocation2 + $0x10] sm:$0xff]  ;;  %v534_v50 = vstv (!%p763_p1), %s529_s20 }
  0x74   : > { %843 = vmatpush3.bf16.msra.mxu0 %v840_v11  ;;  %877 = vmatpush3.bf16.msra.mxu1 %v840_v11  ;;  %v764_v51 = vld [vmem:[%s1523_s2] ss:$0 sm:$0xff] (!%p763_p1) }
  0x75   : > { %845 = vmatprep.subr.bf16.mxu0 %v844_v14  ;;  %870 = vmatprep.subr.bf16.mxu1 %v844_v14 }
  0x78   : > { %847 = vmatpush3.bf16.msra.mxu0 %v844_v14  ;;  %878 = vmatpush3.bf16.msra.mxu1 %v844_v14 }
  0x79   : > { %849 = vmatprep.subr.bf16.mxu0 %v848_v19  ;;  %871 = vmatprep.subr.bf16.mxu1 %v848_v19 }
  0x7c   : > { %851 = vmatpush3.bf16.msra.mxu0 %v848_v19  ;;  %879 = vmatpush3.bf16.msra.mxu1 %v848_v19 }
  0x7d   : > { %853 = vmatprep.subr.bf16.mxu0 %v852_v22  ;;  %872 = vmatprep.subr.bf16.mxu1 %v852_v22 }
  0x80   : > { %855 = vmatpush3.bf16.msra.mxu0 %v852_v22  ;;  %880 = vmatpush3.bf16.msra.mxu1 %v852_v22 }
  0x81   : > { %857 = vmatprep.subr.bf16.mxu0 %v856_v25  ;;  %873 = vmatprep.subr.bf16.mxu1 %v856_v25 }
  0x84   : > { %859 = vmatpush3.bf16.msra.mxu0 %v856_v25  ;;  %881 = vmatpush3.bf16.msra.mxu1 %v856_v25 }
  0x85   : > { %861 = vmatprep.subr.bf16.mxu0 %v860_v28  ;;  %874 = vmatprep.subr.bf16.mxu1 %v860_v28 }
  0x88   : > { %863 = vmatpush3.bf16.msra.mxu0 %v860_v28  ;;  %882 = vmatpush3.bf16.msra.mxu1 %v860_v28 }
  0x89   : > { %865 = vmatprep.subr.bf16.mxu0 %v864_v31  ;;  %875 = vmatprep.subr.bf16.mxu1 %v864_v31 }
  0x8c   : > { %867 = vmatpush3.bf16.msra.mxu0 %v864_v31  ;;  %883 = vmatpush3.bf16.msra.mxu1 %v864_v31 }
  0x8f   : > { %831 = vmatmul.mubr.f32.vlgmr.msra.gmra.mrb[0].mxu0 %v409_v32  ;;  %834 = vmatmul.mubr.f32.vlgmr.msra.gmra.mrb[0].mxu1 %v411_v33 }
 0x160   : > { %528 = sbr.rel (%p763_p1) target bundleno = 371 (0x173), region = 96 }
 0x162   : > { %v832_v38 = vpop.f32.mrb[0].mxu0  ;;  %v835_v39 = vpop.f32.mrb[0].mxu1 }
 0x163   : > { %v518_v40 = vadd.f32 %v832_v38, %v413_v34  ;;  %v520_v41 = vadd.f32 %v835_v39, %v415_v35  ;;  %v498_v42 = vpop.f32.mrb[1].mxu0  ;;  %v508_v43 = vpop.f32.mrb[1].mxu1 }
 0x164   : > { %v517_v44 = vadd.f32 %v498_v42, %v412_v36  ;;  %v519_v45 = vadd.f32 %v508_v43, %v414_v37 }
 0x165   : > { %522 = vst [vmem:[#allocation2 + $0x8] sm:$0xff] %v518_v40  ;;  %524 = vst [vmem:[#allocation2 + $0x18] sm:$0xff] %v520_v41 }
 0x166   : > { %521 = vst [vmem:[#allocation2] sm:$0xff] %v517_v44  ;;  %523 = vst [vmem:[#allocation2 + $0x10] sm:$0xff] %v519_v45 }
 0x16c   : > { %v531_v47 = vld [vmem:[#allocation2 + $0x8] sm:$0xff]  ;;  %v533_v49 = vld [vmem:[#allocation2 + $0x18] sm:$0xff] }
 0x16d   : > { %v530_v46 = vld [vmem:[#allocation2] sm:$0xff]  ;;  %v532_v48 = vld [vmem:[#allocation2 + $0x10] sm:$0xff]  ;;  %v536_v53 = vmul.f32 %v534_v50, %v531_v47  ;;  %v538_v55 = vmul.f32 %v534_v50, %v533_v49 }
 0x16e   : > { %v535_v52 = vmul.f32 %v534_v50, %v530_v46  ;;  %v537_v54 = vmul.f32 %v534_v50, %v532_v48 }
 0x16f   : > { %v547_v57 = vadd.f32 %v764_v51, %v536_v53  ;;  %v549_v59 = vadd.f32 %v764_v51, %v538_v55 }
 0x170   : > { %v546_v56 = vadd.f32 %v764_v51, %v535_v52  ;;  %v548_v58 = vadd.f32 %v764_v51, %v537_v54 }
 0x171   : > { %551 = vst [vmem:[%s1410_s7 + $0x8] sm:$0xff] %v547_v57  ;;  %553 = vst [vmem:[%s1410_s7 + $0x18] sm:$0xff] %v549_v59 }
 0x172   : > { %550 = vst [vmem:[%s1410_s7] sm:$0xff] %v546_v56  ;;  %552 = vst [vmem:[%s1410_s7 + $0x10] sm:$0xff] %v548_v58 }
 0x173 PF: > { %s1443_s22 = scalar_lea.sflag [#allocation6], %s375_s6  ;;  %561 = sbr.rel (!%p1317_p7) target bundleno = 406 (0x196), region = 100 }
 0x174   : > { %s766_s0 = sshll.u32 (%p1317_p7), %s1167_s23, 2 }
 0x175   : > { %s563_s29 = ssub.s32 (%p1317_p7), 6, %s766_s0 }
 0x176   : > { %p564_p2 = scmp.lt.s32.totalorder (%p1317_p7), %s563_s29, 4 }
 0x17a   : > { %s1566_s29 = smov (!%p564_p2, %s563_s29), 4 }
 0x17b   : > { %s1448_s25 = sshll.u32 %s1566_s29, 7 }
 0x17c   : > { %s568_s14 = ssub.s32 512, %s1448_s25 }
 0x17d   : > { %569 = vsyncadd %s1443_s22, %s568_s14  ;;  %p768_p3 = scmp.ne.s32.totalorder %s1448_s25, 0  ;;  %s777_s6 = sshll.u32 %s1167_s23, 9 }
 0x17e   : > { %s1457_s30 = scalar_lea.hbm %s1525_s4, %s777_s6  ;;  %s575_s28 = sshll.u32 %s1410_s7, 4  ;;  %s1460_s28 = int_to_ptr.vmem [resolvable:$true] %s575_s28 }
 0x17f   : > { %s1037_s10 = scalar_lea.vmem %s1460_s28, %s1448_s25  ;;  %s1214_s5 = smov [#allocation5]  }
 0x180   : > { %p1038_p7 = scmp.ne.s32.totalorder %s1460_s28, %s1037_s10  ;;  %s1041_s9 = sshll.u32 %s1214_s5, 4  ;;  %s1042_s9 = int_to_ptr.vmem [resolvable:$false] %s1041_s9 }
 0x181   : > { %s1043_s23 = scalar_lea.vmem %s1042_s9, 1024  ;;  %p1044_p6 = scmp.lt.s32.totalorder %s1460_s28, %s1042_s9 }
 0x182   : > { %p1039_p4 = pnand %p1038_p7, %p768_p3  ;;  %p1045_p8 = scmp.lt.s32.totalorder %s1043_s23, %s1037_s10 }
 0x184   : > { %p1040_p5 = pneg %p1039_p4  ;;  %p1046_p9 = por %p1045_p8, %p1044_p6 }
 0x186   : > { %p1047_p10 = pnand %p1046_p9, %p1040_p5 }
 0x188   : > { %1050 = shalt.err (!%p1047_p10)
}
 0x189   : > { %s1051_s16 = scalar_lea.hbm %s1457_s30, %s1448_s25  ;;  %s1055_s15 = scalar_lea.hbm %s1525_s4, 768 }
 0x18a   : > { %p1052_p11 = scmp.ne.s32.totalorder %s1457_s30, %s1051_s16  ;;  %p1056_p1 = scmp.lt.u32.totalorder %s1457_s30, %s1525_s4 }
 0x18b   : > { %p1057_p2 = scmp.lt.u32.totalorder %s1055_s15, %s1051_s16  ;;  %p1059_p4 = scmp.lt.u32.totalorder %s1051_s16, %s1457_s30 }
 0x18c   : > { %p1053_p13 = pnand %p1052_p11, %p768_p3 }
 0x18d   : > { %p1058_p7 = por %p1057_p2, %p1056_p1 }
 0x18e   : > { %p1054_p0 = pneg %p1053_p13 }
 0x18f   : > { %p1060_p5 = por %p1059_p4, %p1058_p7 }
 0x191   : > { %p1061_p6 = pnand %p1060_p5, %p1054_p0 }
 0x193   : > { %1064 = shalt.err (!%p1061_p6)
}
 0x194   : > { %s1215_s29 = smov 128   ;;  %s1216_s14 = smov 8  }
 0x195   : > { %581 = dma.vmem_to_hbm [thread:$0]  (%p768_p3), %s1460_s28, %s1448_s25, %s1457_s30, %s1443_s22, %s1215_s29, %s1215_s29, %s1216_s14  }
 0x196 PF: > { %p889_p8 = scmp.ge.s32.totalorder %s1179_s3, 2  ;;  %s590_s6 = sand.u32 1, %s1143_s17  }
 0x197   : > { %s591_s8 = scalar_lea.sflag [#allocation6], %s590_s6 }
 0x198   : > { %p886_p9 = pnand %p889_p8, %p1325_p12 }
 0x19a   : > { %1138 = dma.done.wait (!%p886_p9), %s591_s8, 512  }
 0x19b   : > { %1140 = vsyncadd (!%p886_p9), %s591_s8, 4294966784  ;;  %s18_s3 = sadd.s32 1, %s1179_s3   ;;  %s1540_s23 = sld [smem:[#allocation8_spill]] }
 0x19c   : > { %p15_p10 = scmp.ge.s32.totalorder %s18_s3, 6   ;;  %s1541_s25 = sld [smem:[#allocation9_spill]] }
 0x19d   : > { %s1542_s27 = sld [smem:[#allocation10_spill]]  ;;  %s1543_s17 = smov %s1147_s18 }
 0x19e   : > { %s1544_s18 = smov %s1151_s19  ;;  %s1545_s19 = smov %s1330_s12 }
 0x19f   : > { %s1546_s20 = smov %s1159_s21  ;;  %s1547_s21 = smov %s1333_s13 }
 0x1a0   : > { %s1548_s22 = smov %s1171_s24  ;;  %17 = sbr.rel (!%p15_p10) target bundleno = 9 (0x9), region = 172 }
 0x1a2   : > { %s1549_s24 = smov %s1541_s25 }
 0x1a3   : > { %s1550_s25 = smov %s1542_s27 }
 0x1a7   :  { %596 = vsyncpa [#allocation6], 1 }
 0x1a8   :  { %598 = vsyncpa [#allocation6 + $0x1], 1 }

// kernel: _spectral_norm_linear.2
= control target key start
LH: loop header
LB: loop body
LE: loop exit
PB: predicated region body
PF: predicated region fallthrough
CT: control target
= control target key end

     0   :  { %s1308_s0 = inlined_call_operand.vmem [shape: f32[256,128], index: 0, kind: input, shape index: {}]   ;;  %s1309_s1 = inlined_call_operand.vmem [shape: f32[1,128], index: 1, kind: input, shape index: {}]   ;;  %s1310_s2 = inlined_call_operand.<no memory space> [shape: f32[1,1], index: 2, kind: input, shape index: {}]   ;;  %s1311_s3 = inlined_call_operand.hbm [shape: f32[1,128], index: 3, kind: output, shape index: {0}]   ;;  %s1312_s4 = inlined_call_operand.vmem [shape: f32[256,1], index: 4, kind: output, shape index: {1}]   ;;  %s1313_s5 = inlined_call_operand.hbm [shape: f32[1,1], index: 5, kind: output, shape index: {2}]  }
   0x1   :  { %v11_v0 = vstv %s1310_s2 }
   0x2   :  { %12 = vst [vmem:[#allocation2] sm:$0x1] %v11_v0 }
   0x3   :  { %13 = vsyncpa [#allocation4], 0  ;;  %v576_v1 = vld [vmem:[%s1308_s0] sm:$0xff]  ;;  %v586_v3 = vld [vmem:[%s1308_s0 + $0x10] sm:$0xff] }
   0x4   :  { %v581_v2 = vld [vmem:[%s1309_s1] ss:$0 sm:$0xff]  ;;  %v595_v6 = vld [vmem:[%s1308_s0 + $0x8] sm:$0xff]  ;;  %v600_v7 = vld [vmem:[%s1308_s0 + $0x18] sm:$0xff] }
   0x5   :  { %v60_v4 = vmul.f32 %v581_v2, %v576_v1  ;;  %v62_v5 = vmul.f32 %v581_v2, %v586_v3  ;;  %v61_v8 = vmul.f32 %v581_v2, %v595_v6  ;;  %v63_v9 = vmul.f32 %v581_v2, %v600_v7  ;;  %v609_v10 = vld [vmem:[%s1308_s0 + $0x20] sm:$0xff]  ;;  %v614_v11 = vld [vmem:[%s1308_s0 + $0x28] sm:$0xff]  ;;  %v623_v14 = vld [vmem:[%s1308_s0 + $0x30] sm:$0xff] }
   0x6   :  { %v64_v12 = vmul.f32 %v581_v2, %v609_v10  ;;  %v65_v13 = vmul.f32 %v581_v2, %v614_v11  ;;  %v628_v15 = vld [vmem:[%s1308_s0 + $0x38] sm:$0xff]  ;;  %v66_v16 = vmul.f32 %v581_v2, %v623_v14 }
   0x7   :  { %92 = vadd.xlane.f32.xlu0 %v60_v4  ;;  %96 = vadd.xlane.f32.xlu1 %v62_v5  ;;  %v67_v17 = vmul.f32 %v581_v2, %v628_v15 }
   0xb   :  { %94 = vadd.xlane.f32.xlu0 %v61_v8  ;;  %98 = vadd.xlane.f32.xlu1 %v63_v9 }
   0xf   :  { %100 = vadd.xlane.f32.xlu0 %v64_v12  ;;  %102 = vadd.xlane.f32.xlu1 %v65_v13 }
  0x10   :  { %14 = vsyncpa [#allocation6], 0  ;;  %v637_v18 = vld [vmem:[%s1308_s0 + $0x40] sm:$0xff]  ;;  %v642_v19 = vld [vmem:[%s1308_s0 + $0x48] sm:$0xff]  ;;  %vm188_vm0 = vcmask 7168   ;;  %vm366_vm1 = vcmask 1040384  }
  0x11   :  { %v68_v20 = vmul.f32 %v581_v2, %v637_v18  ;;  %v69_v21 = vmul.f32 %v581_v2, %v642_v19  ;;  %v651_v22 = vld [vmem:[%s1308_s0 + $0x50] sm:$0xff]  ;;  %v656_v23 = vld [vmem:[%s1308_s0 + $0x58] sm:$0xff]  ;;  %v665_v26 = vld [vmem:[%s1308_s0 + $0x60] sm:$0xff]  ;;  %s538_s13 = smov [#allocation3]  }
  0x12   :  { %v70_v24 = vmul.f32 %v581_v2, %v651_v22  ;;  %v71_v25 = vmul.f32 %v581_v2, %v656_v23  ;;  %1334 = vst [vmem:[#allocation9_spill] sm:$0xff] %v665_v26  ;;  %v670_v27 = vld [vmem:[%s1308_s0 + $0x68] sm:$0xff]  ;;  %v72_v28 = vmul.f32 %v581_v2, %v665_v26  ;;  %v679_v30 = vld [vmem:[%s1308_s0 + $0x70] sm:$0xff]  ;;  %v684_v31 = vld [vmem:[%s1308_s0 + $0x78] sm:$0xff]  ;;  %s444_s14 = sshll.u32 %s538_s13, 4  ;;  %s445_s14 = int_to_ptr.vmem [resolvable:$true] %s444_s14 }
  0x13   :  { %104 = vadd.xlane.f32.xlu0 %v66_v16  ;;  %106 = vadd.xlane.f32.xlu1 %v67_v17  ;;  %1335 = vst [vmem:[#allocation10_spill] sm:$0xff] %v670_v27  ;;  %v73_v29 = vmul.f32 %v581_v2, %v670_v27  ;;  %1336 = vst [vmem:[#allocation11_spill] sm:$0xff] %v679_v30  ;;  %v74_v32 = vmul.f32 %v581_v2, %v679_v30  ;;  %v693_v34 = vld [vmem:[%s1308_s0 + $0x80] sm:$0xff]  ;;  %v698_v35 = vld [vmem:[%s1308_s0 + $0x88] sm:$0xff]  ;;  %s490_s15 = scalar_lea.vmem %s445_s14, 16  ;;  %s494_s16 = scalar_lea.vmem %s445_s14, 32 }
  0x14   :  { %1337 = vst [vmem:[#allocation12_spill] sm:$0xff] %v684_v31  ;;  %v75_v33 = vmul.f32 %v581_v2, %v684_v31  ;;  %1338 = vst [vmem:[#allocation13_spill] sm:$0xff] %v693_v34  ;;  %v76_v36 = vmul.f32 %v581_v2, %v693_v34  ;;  %v77_v37 = vmul.f32 %v581_v2, %v698_v35  ;;  %v707_v38 = vld [vmem:[%s1308_s0 + $0x90] sm:$0xff]  ;;  %v712_v39 = vld [vmem:[%s1308_s0 + $0x98] sm:$0xff]  ;;  %p491_p0 = scmp.ne.s32.totalorder %s445_s14, %s490_s15  ;;  %p495_p1 = scmp.lt.s32.totalorder %s445_s14, %s445_s14 }
  0x15   :  { %1339 = vst [vmem:[#allocation14_spill] sm:$0xff] %v698_v35  ;;  %1340 = vst [vmem:[#allocation15_spill] sm:$0xff] %v707_v38  ;;  %v78_v40 = vmul.f32 %v581_v2, %v707_v38  ;;  %v79_v41 = vmul.f32 %v581_v2, %v712_v39  ;;  %v721_v42 = vld [vmem:[%s1308_s0 + $0xa0] sm:$0xff]  ;;  %v726_v43 = vld [vmem:[%s1308_s0 + $0xa8] sm:$0xff]  ;;  %p496_p2 = scmp.lt.s32.totalorder %s494_s16, %s490_s15 }
  0x16   :  { %1341 = vst [vmem:[#allocation16_spill] sm:$0xff] %v712_v39  ;;  %1342 = vst [vmem:[#allocation17_spill] sm:$0xff] %v721_v42  ;;  %v80_v44 = vmul.f32 %v581_v2, %v721_v42  ;;  %v81_v45 = vmul.f32 %v581_v2, %v726_v43  ;;  %v735_v46 = vld [vmem:[%s1308_s0 + $0xb0] sm:$0xff]  ;;  %v740_v47 = vld [vmem:[%s1308_s0 + $0xb8] sm:$0xff] }
  0x17   :  { %108 = vadd.xlane.f32.xlu0 %v68_v20  ;;  %110 = vadd.xlane.f32.xlu1 %v69_v21  ;;  %1343 = vst [vmem:[#allocation18_spill] sm:$0xff] %v726_v43  ;;  %1344 = vst [vmem:[#allocation19_spill] sm:$0xff] %v735_v46  ;;  %v82_v48 = vmul.f32 %v581_v2, %v735_v46  ;;  %v83_v49 = vmul.f32 %v581_v2, %v740_v47  ;;  %v749_v50 = vld [vmem:[%s1308_s0 + $0xc0] sm:$0xff]  ;;  %v754_v51 = vld [vmem:[%s1308_s0 + $0xc8] sm:$0xff]  ;;  %p497_p3 = por %p496_p2, %p495_p1 }
  0x18   :  { %1345 = vst [vmem:[#allocation20_spill] sm:$0xff] %v740_v47  ;;  %1346 = vst [vmem:[#allocation21_spill] sm:$0xff] %v749_v50  ;;  %v84_v52 = vmul.f32 %v581_v2, %v749_v50  ;;  %v85_v53 = vmul.f32 %v581_v2, %v754_v51  ;;  %v763_v54 = vld [vmem:[%s1308_s0 + $0xd0] sm:$0xff]  ;;  %v768_v55 = vld [vmem:[%s1308_s0 + $0xd8] sm:$0xff] }
  0x19   :  { %1347 = vst [vmem:[#allocation22_spill] sm:$0xff] %v754_v51  ;;  %1348 = vst [vmem:[#allocation23_spill] sm:$0xff] %v763_v54  ;;  %v86_v56 = vmul.f32 %v581_v2, %v763_v54  ;;  %v87_v57 = vmul.f32 %v581_v2, %v768_v55  ;;  %v777_v58 = vld [vmem:[%s1308_s0 + $0xe0] sm:$0xff]  ;;  %v782_v59 = vld [vmem:[%s1308_s0 + $0xe8] sm:$0xff]  ;;  %p498_p4 = pnand %p497_p3, %p491_p0 }
  0x1a   :  { %1349 = vst [vmem:[#allocation24_spill] sm:$0xff] %v768_v55  ;;  %1350 = vst [vmem:[#allocation25_spill] sm:$0xff] %v777_v58  ;;  %v88_v60 = vmul.f32 %v581_v2, %v777_v58  ;;  %v89_v61 = vmul.f32 %v581_v2, %v782_v59  ;;  %v791_v62 = vld [vmem:[%s1308_s0 + $0xf0] sm:$0xff]  ;;  %v796_v63 = vld [vmem:[%s1308_s0 + $0xf8] sm:$0xff] }
  0x1b   :  { %112 = vadd.xlane.f32.xlu0 %v70_v24  ;;  %114 = vadd.xlane.f32.xlu1 %v71_v25  ;;  %1351 = vst [vmem:[#allocation26_spill] sm:$0xff] %v782_v59  ;;  %1352 = vst [vmem:[#allocation27_spill] sm:$0xff] %v791_v62  ;;  %v90_v0 = vmul.f32 %v581_v2, %v791_v62  ;;  %v91_v4 = vmul.f32 %v581_v2, %v796_v63 }
  0x1c   :  { %1353 = vst [vmem:[#allocation28_spill] sm:$0xff] %v796_v63 }
  0x1f   :  { %116 = vadd.xlane.f32.xlu0 %v72_v28  ;;  %118 = vadd.xlane.f32.xlu1 %v73_v29 }
  0x23   :  { %120 = vadd.xlane.f32.xlu0 %v74_v32  ;;  %122 = vadd.xlane.f32.xlu1 %v75_v33 }
  0x27   :  { %124 = vadd.xlane.f32.xlu0 %v76_v36  ;;  %126 = vadd.xlane.f32.xlu1 %v77_v37 }
  0x2b   :  { %128 = vadd.xlane.f32.xlu0 %v78_v40  ;;  %130 = vadd.xlane.f32.xlu1 %v79_v41 }
  0x2f   :  { %132 = vadd.xlane.f32.xlu0 %v80_v44  ;;  %134 = vadd.xlane.f32.xlu1 %v81_v45 }
  0x33   :  { %136 = vadd.xlane.f32.xlu0 %v82_v48  ;;  %138 = vadd.xlane.f32.xlu1 %v83_v49 }
  0x37   :  { %140 = vadd.xlane.f32.xlu0 %v84_v52  ;;  %142 = vadd.xlane.f32.xlu1 %v85_v53 }
  0x3b   :  { %144 = vadd.xlane.f32.xlu0 %v86_v56  ;;  %146 = vadd.xlane.f32.xlu1 %v87_v57 }
  0x3f   :  { %148 = vadd.xlane.f32.xlu0 %v88_v60  ;;  %150 = vadd.xlane.f32.xlu1 %v89_v61 }
  0x43   :  { %152 = vadd.xlane.f32.xlu0 %v90_v0  ;;  %154 = vadd.xlane.f32.xlu1 %v91_v4 }
  0x94   :  { %v802_v5 = vpop.xlane.xlu0 %92  ;;  %v804_v8 = vpop.xlane.xlu1 %96 }
  0x95   :  { %v156_v9 = vmul.f32 %v802_v5, %v802_v5  ;;  %v158_v16 = vmul.f32 %v804_v8, %v804_v8 }
  0x97   :  { %v189_v20 = vsel %vm188_vm0, %v156_v9, 0.0  ;;  %v192_v29 = vsel %vm188_vm0, %v158_v16, 0.0 }
  0x98   :  { %v808_v12 = vpop.xlane.xlu0 %94  ;;  %v810_v13 = vpop.xlane.xlu1 %98 }
  0x99   :  { %v157_v2 = vmul.f32 %v808_v12, %v808_v12  ;;  %v159_v17 = vmul.f32 %v810_v13, %v810_v13 }
  0x9b   :  { %v190_v21 = vsel %vm188_vm0, %v157_v2, 0.0  ;;  %v194_v32 = vsel %vm188_vm0, %v159_v17, 0.0 }
  0x9c   :  { %v191_v24 = vadd.f32 %v190_v21, %v189_v20  ;;  %v820_v25 = vpop.xlane.xlu0 %100  ;;  %v822_v28 = vpop.xlane.xlu1 %102 }
  0x9d   :  { %v160_v33 = vmul.f32 %v820_v25, %v820_v25  ;;  %v161_v36 = vmul.f32 %v822_v28, %v822_v28 }
  0x9e   :  { %v193_v37 = vadd.f32 %v192_v29, %v191_v24 }
  0x9f   :  { %v196_v40 = vsel %vm188_vm0, %v160_v33, 0.0  ;;  %v198_v48 = vsel %vm188_vm0, %v161_v36, 0.0 }
  0xa0   :  { %v195_v41 = vadd.f32 %v194_v32, %v193_v37  ;;  %v831_v44 = vpop.xlane.xlu0 %104  ;;  %v833_v45 = vpop.xlane.xlu1 %106 }
  0xa1   :  { %v162_v49 = vmul.f32 %v831_v44, %v831_v44  ;;  %v163_v52 = vmul.f32 %v833_v45, %v833_v45 }
  0xa2   :  { %v197_v53 = vadd.f32 %v196_v40, %v195_v41 }
  0xa3   :  { %v200_v56 = vsel %vm188_vm0, %v162_v49, 0.0  ;;  %v202_v0 = vsel %vm188_vm0, %v163_v52, 0.0 }
  0xa4   :  { %v199_v57 = vadd.f32 %v198_v48, %v197_v53  ;;  %v841_v60 = vpop.xlane.xlu0 %108  ;;  %v843_v61 = vpop.xlane.xlu1 %110 }
  0xa5   :  { %v164_v4 = vmul.f32 %v841_v60, %v841_v60  ;;  %v165_v9 = vmul.f32 %v843_v61, %v843_v61 }
  0xa6   :  { %v201_v16 = vadd.f32 %v200_v56, %v199_v57 }
  0xa7   :  { %v204_v2 = vsel %vm188_vm0, %v164_v4, 0.0  ;;  %v206_v24 = vsel %vm188_vm0, %v165_v9, 0.0 }
  0xa8   :  { %v203_v17 = vadd.f32 %v202_v0, %v201_v16  ;;  %v851_v20 = vpop.xlane.xlu0 %112  ;;  %v853_v21 = vpop.xlane.xlu1 %114 }
  0xa9   :  { %v166_v29 = vmul.f32 %v851_v20, %v851_v20  ;;  %v167_v32 = vmul.f32 %v853_v21, %v853_v21 }
  0xaa   :  { %v205_v33 = vadd.f32 %v204_v2, %v203_v17 }
  0xab   :  { %v208_v36 = vsel %vm188_vm0, %v166_v29, 0.0  ;;  %v210_v48 = vsel %vm188_vm0, %v167_v32, 0.0 }
  0xac   :  { %v207_v37 = vadd.f32 %v206_v24, %v205_v33  ;;  %v861_v40 = vpop.xlane.xlu0 %116  ;;  %v863_v41 = vpop.xlane.xlu1 %118 }
  0xad   :  { %v168_v49 = vmul.f32 %v861_v40, %v861_v40  ;;  %v169_v52 = vmul.f32 %v863_v41, %v863_v41 }
  0xae   :  { %v209_v53 = vadd.f32 %v208_v36, %v207_v37 }
  0xaf   :  { %v212_v56 = vsel %vm188_vm0, %v168_v49, 0.0  ;;  %v214_v9 = vsel %vm188_vm0, %v169_v52, 0.0 }
  0xb0   :  { %v211_v57 = vadd.f32 %v210_v48, %v209_v53  ;;  %v871_v0 = vpop.xlane.xlu0 %120  ;;  %v873_v4 = vpop.xlane.xlu1 %122 }
  0xb1   :  { %v170_v16 = vmul.f32 %v871_v0, %v871_v0  ;;  %v171_v2 = vmul.f32 %v873_v4, %v873_v4 }
  0xb2   :  { %v213_v17 = vadd.f32 %v212_v56, %v211_v57 }
  0xb3   :  { %v216_v24 = vsel %vm188_vm0, %v170_v16, 0.0  ;;  %v218_v36 = vsel %vm188_vm0, %v171_v2, 0.0 }
  0xb4   :  { %v215_v29 = vadd.f32 %v214_v9, %v213_v17  ;;  %v881_v32 = vpop.xlane.xlu0 %124  ;;  %v883_v33 = vpop.xlane.xlu1 %126 }
  0xb5   :  { %v172_v37 = vmul.f32 %v881_v32, %v881_v32  ;;  %v173_v48 = vmul.f32 %v883_v33, %v883_v33 }
  0xb6   :  { %v217_v49 = vadd.f32 %v216_v24, %v215_v29 }
  0xb7   :  { %v220_v52 = vsel %vm188_vm0, %v172_v37, 0.0  ;;  %v222_v9 = vsel %vm188_vm0, %v173_v48, 0.0 }
  0xb8   :  { %v219_v53 = vadd.f32 %v218_v36, %v217_v49  ;;  %v891_v56 = vpop.xlane.xlu0 %128  ;;  %v893_v57 = vpop.xlane.xlu1 %130 }
  0xb9   :  { %v174_v16 = vmul.f32 %v891_v56, %v891_v56  ;;  %v175_v2 = vmul.f32 %v893_v57, %v893_v57 }
  0xba   :  { %v221_v17 = vadd.f32 %v220_v52, %v219_v53 }
  0xbb   :  { %v224_v63 = vsel %vm188_vm0, %v174_v16, 0.0  ;;  %v226_v36 = vsel %vm188_vm0, %v175_v2, 0.0 }
  0xbc   :  { %v223_v62 = vadd.f32 %v222_v9, %v221_v17  ;;  %v901_v24 = vpop.xlane.xlu0 %132  ;;  %v903_v29 = vpop.xlane.xlu1 %134 }
  0xbd   :  { %v176_v37 = vmul.f32 %v901_v24, %v901_v24  ;;  %v177_v48 = vmul.f32 %v903_v29, %v903_v29 }
  0xbe   :  { %v225_v49 = vadd.f32 %v224_v63, %v223_v62 }
  0xbf   :  { %v228_v59 = vsel %vm188_vm0, %v176_v37, 0.0  ;;  %v230_v9 = vsel %vm188_vm0, %v177_v48, 0.0 }
  0xc0   :  { %v227_v58 = vadd.f32 %v226_v36, %v225_v49  ;;  %v911_v52 = vpop.xlane.xlu0 %136  ;;  %v913_v53 = vpop.xlane.xlu1 %138 }
  0xc1   :  { %v178_v16 = vmul.f32 %v911_v52, %v911_v52  ;;  %v179_v2 = vmul.f32 %v913_v53, %v913_v53 }
  0xc2   :  { %v229_v17 = vadd.f32 %v228_v59, %v227_v58 }
  0xc3   :  { %v232_v55 = vsel %vm188_vm0, %v178_v16, 0.0  ;;  %v234_v36 = vsel %vm188_vm0, %v179_v2, 0.0 }
  0xc4   :  { %v231_v54 = vadd.f32 %v230_v9, %v229_v17  ;;  %v921_v62 = vpop.xlane.xlu0 %140  ;;  %v923_v63 = vpop.xlane.xlu1 %142 }
  0xc5   :  { %v180_v37 = vmul.f32 %v921_v62, %v921_v62  ;;  %v181_v48 = vmul.f32 %v923_v63, %v923_v63 }
  0xc6   :  { %v233_v49 = vadd.f32 %v232_v55, %v231_v54 }
  0xc7   :  { %v236_v51 = vsel %vm188_vm0, %v180_v37, 0.0  ;;  %v238_v9 = vsel %vm188_vm0, %v181_v48, 0.0 }
  0xc8   :  { %v235_v50 = vadd.f32 %v234_v36, %v233_v49  ;;  %v931_v58 = vpop.xlane.xlu0 %144  ;;  %v933_v59 = vpop.xlane.xlu1 %146 }
  0xc9   :  { %v182_v16 = vmul.f32 %v931_v58, %v931_v58  ;;  %v183_v2 = vmul.f32 %v933_v59, %v933_v59 }
  0xca   :  { %v237_v17 = vadd.f32 %v236_v51, %v235_v50 }
  0xcb   :  { %v240_v47 = vsel %vm188_vm0, %v182_v16, 0.0  ;;  %v242_v36 = vsel %vm188_vm0, %v183_v2, 0.0 }
  0xcc   :  { %v239_v46 = vadd.f32 %v238_v9, %v237_v17  ;;  %v941_v54 = vpop.xlane.xlu0 %148  ;;  %v943_v55 = vpop.xlane.xlu1 %150 }
  0xcd   :  { %v184_v37 = vmul.f32 %v941_v54, %v941_v54  ;;  %v185_v48 = vmul.f32 %v943_v55, %v943_v55 }
  0xce   :  { %v241_v49 = vadd.f32 %v240_v47, %v239_v46 }
  0xcf   :  { %v244_v43 = vsel %vm188_vm0, %v184_v37, 0.0  ;;  %v246_v9 = vsel %vm188_vm0, %v185_v48, 0.0 }
  0xd0   :  { %v243_v42 = vadd.f32 %v242_v36, %v241_v49  ;;  %v951_v50 = vpop.xlane.xlu0 %152  ;;  %v953_v51 = vpop.xlane.xlu1 %154 }
  0xd1   :  { %v186_v16 = vmul.f32 %v951_v50, %v951_v50  ;;  %v187_v2 = vmul.f32 %v953_v51, %v953_v51 }
  0xd2   :  { %v245_v17 = vadd.f32 %v244_v43, %v243_v42 }
  0xd3   :  { %v248_v39 = vsel %vm188_vm0, %v186_v16, 0.0  ;;  %v250_v46 = vsel %vm188_vm0, %v187_v2, 0.0 }
  0xd4   :  { %v247_v38 = vadd.f32 %v246_v9, %v245_v17 }
  0xd6   :  { %v249_v47 = vadd.f32 %v248_v39, %v247_v38 }
  0xd8   :  { %v251_v36 = vadd.f32 %v250_v46, %v249_v47 }
  0xda   :  { %252 = vadd.xlane.f32.xlu0 %v251_v36  ;;  %v1354_v36 = vld [vmem:[#allocation9_spill] sm:$0xff] }
 0x167   :  { %v253_v37 = vpop.xlane.xlu0 %252 }
 0x168   :  { %v254_v49 = vrot.slane %v253_v37, 4 }
 0x16a   :  { %v255_v35 = vadd.f32 %v254_v49, %v253_v37  ;;  %v1355_v49 = vld [vmem:[#allocation10_spill] sm:$0xff] }
 0x16c   :  { %v256_v34 = vrot.slane %v255_v35, 2 }
 0x16e   :  { %v257_v48 = vadd.f32 %v256_v34, %v255_v35 }
 0x170   :  { %v258_v31 = vrot.slane %v257_v48, 1 }
 0x172   :  { %v259_v30 = vadd.f32 %v258_v31, %v257_v48 }
 0x174   :  { %472 = vpush %v259_v30 }
 0x1a5   :  { %s473_s0 = spop %472 }
 0x1a6   :  { %v261_v27 = vstv %s473_s0 }
 0x1a7   :  { %v262_v26 = vadd.f32 1e-30, %v261_v27 }
 0x1a9   :  { %480 = vrsqrt.f32 %v262_v26 }
 0x1b3   :  { %v481_v42 = vpop.eup %480 }
 0x1b4   :  { %v963_v43 = vmul.f32 %v481_v42, %v802_v5  ;;  %v966_v38 = vmul.f32 %v481_v42, %v808_v12  ;;  %v969_v39 = vmul.f32 %v481_v42, %v804_v8  ;;  %v972_v9 = vmul.f32 %v481_v42, %v810_v13 }
 0x1b5   :  { %v975_v31 = vmul.f32 %v481_v42, %v820_v25  ;;  %v978_v30 = vmul.f32 %v481_v42, %v822_v28  ;;  %v981_v26 = vmul.f32 %v481_v42, %v831_v44  ;;  %v984_v27 = vmul.f32 %v481_v42, %v833_v45 }
 0x1b6   :  { %v987_v34 = vmul.f32 %v481_v42, %v841_v60  ;;  %v990_v35 = vmul.f32 %v481_v42, %v843_v61  ;;  %v993_v5 = vmul.f32 %v481_v42, %v851_v20  ;;  %v996_v8 = vmul.f32 %v481_v42, %v853_v21  ;;  %406 = vst.msk [vmem:[%s1312_s4] sm:$0xff] %vm188_vm0, %v963_v43 }
 0x1b7   :  { %407 = vst.msk [vmem:[%s1312_s4 + $0x8] sm:$0xff] %vm188_vm0, %v966_v38  ;;  %408 = vst.msk [vmem:[%s1312_s4 + $0x10] sm:$0xff] %vm188_vm0, %v969_v39  ;;  %v1019_v12 = vmul.f32 %v481_v42, %v861_v40  ;;  %v1022_v13 = vmul.f32 %v481_v42, %v863_v41  ;;  %v1025_v25 = vmul.f32 %v481_v42, %v871_v0 }
 0x1b8   :  { %409 = vst.msk [vmem:[%s1312_s4 + $0x18] sm:$0xff] %vm188_vm0, %v972_v9  ;;  %v1028_v28 = vmul.f32 %v481_v42, %v873_v4  ;;  %410 = vst.msk [vmem:[%s1312_s4 + $0x20] sm:$0xff] %vm188_vm0, %v975_v31  ;;  %v1051_v44 = vmul.f32 %v481_v42, %v881_v32  ;;  %v1054_v45 = vmul.f32 %v481_v42, %v883_v33 }
 0x1b9   :  { %411 = vst.msk [vmem:[%s1312_s4 + $0x28] sm:$0xff] %vm188_vm0, %v978_v30  ;;  %412 = vst.msk [vmem:[%s1312_s4 + $0x30] sm:$0xff] %vm188_vm0, %v981_v26  ;;  %v1057_v60 = vmul.f32 %v481_v42, %v891_v56  ;;  %v1060_v61 = vmul.f32 %v481_v42, %v893_v57  ;;  %v1083_v20 = vmul.f32 %v481_v42, %v901_v24 }
 0x1ba   :  { %413 = vst.msk [vmem:[%s1312_s4 + $0x38] sm:$0xff] %vm188_vm0, %v984_v27  ;;  %414 = vst.msk [vmem:[%s1312_s4 + $0x40] sm:$0xff] %vm188_vm0, %v987_v34  ;;  %v1086_v21 = vmul.f32 %v481_v42, %v903_v29  ;;  %v1089_v40 = vmul.f32 %v481_v42, %v911_v52  ;;  %v1092_v41 = vmul.f32 %v481_v42, %v913_v53 }
 0x1bb   :  { %415 = vst.msk [vmem:[%s1312_s4 + $0x48] sm:$0xff] %vm188_vm0, %v990_v35  ;;  %416 = vst.msk [vmem:[%s1312_s4 + $0x50] sm:$0xff] %vm188_vm0, %v993_v5  ;;  %v1115_v0 = vmul.f32 %v481_v42, %v921_v62  ;;  %v1118_v4 = vmul.f32 %v481_v42, %v923_v63  ;;  %v1121_v32 = vmul.f32 %v481_v42, %v931_v58 }
 0x1bc   :  { %417 = vst.msk [vmem:[%s1312_s4 + $0x58] sm:$0xff] %vm188_vm0, %v996_v8  ;;  %418 = vst.msk [vmem:[%s1312_s4 + $0x60] sm:$0xff] %vm188_vm0, %v1019_v12  ;;  %v1124_v33 = vmul.f32 %v481_v42, %v933_v59  ;;  %v1147_v56 = vmul.f32 %v481_v42, %v941_v54  ;;  %v1150_v57 = vmul.f32 %v481_v42, %v943_v55 }
 0x1bd   :  { %419 = vst.msk [vmem:[%s1312_s4 + $0x68] sm:$0xff] %vm188_vm0, %v1022_v13  ;;  %420 = vst.msk [vmem:[%s1312_s4 + $0x70] sm:$0xff] %vm188_vm0, %v1025_v25  ;;  %v1153_v24 = vmul.f32 %v481_v42, %v951_v50  ;;  %v1156_v29 = vmul.f32 %v481_v42, %v953_v51  ;;  %v296_v52 = vmul.f32 %v963_v43, %v576_v1  ;;  %v1356_v42 = vld [vmem:[#allocation11_spill] sm:$0xff] }
 0x1be   :  { %421 = vst.msk [vmem:[%s1312_s4 + $0x78] sm:$0xff] %vm188_vm0, %v1028_v28  ;;  %422 = vst.msk [vmem:[%s1312_s4 + $0x80] sm:$0xff] %vm188_vm0, %v1051_v44  ;;  %v297_v53 = vmul.f32 %v966_v38, %v595_v6  ;;  %v298_v62 = vmul.f32 %v969_v39, %v586_v3  ;;  %v299_v58 = vmul.f32 %v972_v9, %v600_v7  ;;  %v1357_v38 = vld [vmem:[#allocation12_spill] sm:$0xff]  ;;  %v1358_v9 = vld [vmem:[#allocation13_spill] sm:$0xff] }
 0x1bf   :  { %423 = vst.msk [vmem:[%s1312_s4 + $0x88] sm:$0xff] %vm188_vm0, %v1054_v45  ;;  %424 = vst.msk [vmem:[%s1312_s4 + $0x90] sm:$0xff] %vm188_vm0, %v1057_v60  ;;  %v300_v54 = vmul.f32 %v975_v31, %v609_v10  ;;  %v301_v50 = vmul.f32 %v978_v30, %v614_v11  ;;  %v302_v1 = vmul.f32 %v981_v26, %v623_v14  ;;  %v1359_v30 = vld [vmem:[#allocation14_spill] sm:$0xff] }
 0x1c0   :  { %425 = vst.msk [vmem:[%s1312_s4 + $0x98] sm:$0xff] %vm188_vm0, %v1060_v61  ;;  %426 = vst.msk [vmem:[%s1312_s4 + $0xa0] sm:$0xff] %vm188_vm0, %v1083_v20  ;;  %v328_v63 = vadd.f32 %v297_v53, %v296_v52  ;;  %v303_v3 = vmul.f32 %v984_v27, %v628_v15  ;;  %v304_v7 = vmul.f32 %v987_v34, %v637_v18  ;;  %v1360_v34 = vld [vmem:[#allocation15_spill] sm:$0xff]  ;;  %v1363_v53 = vld [vmem:[#allocation18_spill] sm:$0xff] }
 0x1c1   :  { %427 = vst.msk [vmem:[%s1312_s4 + $0xa8] sm:$0xff] %vm188_vm0, %v1086_v21  ;;  %428 = vst.msk [vmem:[%s1312_s4 + $0xb0] sm:$0xff] %vm188_vm0, %v1089_v40  ;;  %v305_v10 = vmul.f32 %v990_v35, %v642_v19  ;;  %v306_v11 = vmul.f32 %v993_v5, %v651_v22  ;;  %v307_v14 = vmul.f32 %v996_v8, %v656_v23  ;;  %v1361_v8 = vld [vmem:[#allocation16_spill] sm:$0xff] }
 0x1c2   :  { %429 = vst.msk [vmem:[%s1312_s4 + $0xb8] sm:$0xff] %vm188_vm0, %v1092_v41  ;;  %430 = vst.msk [vmem:[%s1312_s4 + $0xc0] sm:$0xff] %vm188_vm0, %v1115_v0  ;;  %v329_v59 = vadd.f32 %v328_v63, %v298_v62  ;;  %v308_v15 = vmul.f32 %v1019_v12, %v1354_v36  ;;  %v309_v18 = vmul.f32 %v1022_v13, %v1355_v49  ;;  %v1364_v63 = vld [vmem:[#allocation19_spill] sm:$0xff] }
 0x1c3   :  { %431 = vst.msk [vmem:[%s1312_s4 + $0xc8] sm:$0xff] %vm188_vm0, %v1118_v4  ;;  %432 = vst.msk [vmem:[%s1312_s4 + $0xd0] sm:$0xff] %vm188_vm0, %v1121_v32  ;;  %v310_v19 = vmul.f32 %v1025_v25, %v1356_v42  ;;  %v311_v22 = vmul.f32 %v1028_v28, %v1357_v38  ;;  %v312_v23 = vmul.f32 %v1051_v44, %v1358_v9  ;;  %v1362_v25 = vld [vmem:[#allocation17_spill] sm:$0xff] }
 0x1c4   :  { %433 = vst.msk [vmem:[%s1312_s4 + $0xd8] sm:$0xff] %vm188_vm0, %v1124_v33  ;;  %434 = vst.msk [vmem:[%s1312_s4 + $0xe0] sm:$0xff] %vm188_vm0, %v1147_v56  ;;  %v330_v55 = vadd.f32 %v329_v59, %v299_v58  ;;  %v313_v26 = vmul.f32 %v1054_v45, %v1359_v30  ;;  %v314_v35 = vmul.f32 %v1057_v60, %v1360_v34  ;;  %v1365_v59 = vld [vmem:[#allocation20_spill] sm:$0xff] }
 0x1c5   :  { %435 = vst.msk [vmem:[%s1312_s4 + $0xe8] sm:$0xff] %vm188_vm0, %v1150_v57  ;;  %436 = vst.msk [vmem:[%s1312_s4 + $0xf0] sm:$0xff] %vm188_vm0, %v1153_v24  ;;  %v315_v12 = vmul.f32 %v1060_v61, %v1361_v8  ;;  %v316_v28 = vmul.f32 %v1083_v20, %v1362_v25  ;;  %v317_v44 = vmul.f32 %v1086_v21, %v1363_v53 }
 0x1c6   :  { %437 = vst.msk [vmem:[%s1312_s4 + $0xf8] sm:$0xff] %vm188_vm0, %v1156_v29  ;;  %v331_v51 = vadd.f32 %v330_v55, %v300_v54  ;;  %v318_v45 = vmul.f32 %v1089_v40, %v1364_v63  ;;  %v319_v60 = vmul.f32 %v1092_v41, %v1365_v59  ;;  %v1366_v55 = vld [vmem:[#allocation21_spill] sm:$0xff] }
 0x1c7   :  { %v320_v61 = vmul.f32 %v1115_v0, %v1366_v55 }
 0x1c8   :  { %v332_v6 = vadd.f32 %v331_v51, %v301_v50  ;;  %v1367_v51 = vld [vmem:[#allocation22_spill] sm:$0xff] }
 0x1c9   :  { %v321_v20 = vmul.f32 %v1118_v4, %v1367_v51 }
 0x1ca   :  { %v333_v16 = vadd.f32 %v332_v6, %v302_v1  ;;  %v1368_v6 = vld [vmem:[#allocation23_spill] sm:$0xff] }
 0x1cb   :  { %v322_v21 = vmul.f32 %v1121_v32, %v1368_v6 }
 0x1cc   :  { %v334_v2 = vadd.f32 %v333_v16, %v303_v3  ;;  %v1369_v16 = vld [vmem:[#allocation24_spill] sm:$0xff] }
 0x1cd   :  { %v323_v40 = vmul.f32 %v1124_v33, %v1369_v16 }
 0x1ce   :  { %v335_v17 = vadd.f32 %v334_v2, %v304_v7  ;;  %v1370_v2 = vld [vmem:[#allocation25_spill] sm:$0xff] }
 0x1cf   :  { %v324_v41 = vmul.f32 %v1147_v56, %v1370_v2 }
 0x1d0   :  { %v336_v46 = vadd.f32 %v335_v17, %v305_v10  ;;  %v1371_v17 = vld [vmem:[#allocation26_spill] sm:$0xff] }
 0x1d1   :  { %v325_v0 = vmul.f32 %v1150_v57, %v1371_v17 }
 0x1d2   :  { %v337_v47 = vadd.f32 %v336_v46, %v306_v11  ;;  %v1372_v46 = vld [vmem:[#allocation27_spill] sm:$0xff] }
 0x1d3   :  { %v326_v4 = vmul.f32 %v1153_v24, %v1372_v46 }
 0x1d4   :  { %v338_v37 = vadd.f32 %v337_v47, %v307_v14  ;;  %v1373_v47 = vld [vmem:[#allocation28_spill] sm:$0xff] }
 0x1d5   :  { %v327_v32 = vmul.f32 %v1156_v29, %v1373_v47 }
 0x1d6   :  { %v339_v48 = vadd.f32 %v338_v37, %v308_v15 }
 0x1d8   :  { %v340_v43 = vadd.f32 %v339_v48, %v309_v18 }
 0x1da   :  { %v341_v39 = vadd.f32 %v340_v43, %v310_v19 }
 0x1dc   :  { %v342_v31 = vadd.f32 %v341_v39, %v311_v22 }
 0x1de   :  { %v343_v27 = vadd.f32 %v342_v31, %v312_v23 }
 0x1e0   :  { %v344_v5 = vadd.f32 %v343_v27, %v313_v26 }
 0x1e2   :  { %v345_v13 = vadd.f32 %v344_v5, %v314_v35 }
 0x1e4   :  { %v346_v52 = vadd.f32 %v345_v13, %v315_v12 }
 0x1e6   :  { %v347_v62 = vadd.f32 %v346_v52, %v316_v28 }
 0x1e8   :  { %v348_v58 = vadd.f32 %v347_v62, %v317_v44 }
 0x1ea   :  { %v349_v54 = vadd.f32 %v348_v58, %v318_v45 }
 0x1ec   :  { %v350_v50 = vadd.f32 %v349_v54, %v319_v60 }
 0x1ee   :  { %v351_v1 = vadd.f32 %v350_v50, %v320_v61 }
 0x1f0   :  { %v352_v3 = vadd.f32 %v351_v1, %v321_v20 }
 0x1f2   :  { %v353_v7 = vadd.f32 %v352_v3, %v322_v21 }
 0x1f4   :  { %v354_v10 = vadd.f32 %v353_v7, %v323_v40 }
 0x1f6   :  { %v355_v11 = vadd.f32 %v354_v10, %v324_v41 }
 0x1f8   :  { %v356_v14 = vadd.f32 %v355_v11, %v325_v0 }
 0x1fa   :  { %v357_v36 = vadd.f32 %v356_v14, %v326_v4 }
 0x1fc   :  { %v358_v15 = vadd.f32 %v357_v36, %v327_v32 }
 0x1fe   :  { %v359_v37 = vrot.slane %v358_v15, 4 }
 0x200   :  { %v360_v33 = vadd.f32 %v359_v37, %v358_v15 }
 0x202   :  { %v361_v49 = vrot.slane %v360_v33, 2 }
 0x204   :  { %v362_v18 = vadd.f32 %v361_v49, %v360_v33 }
 0x206   :  { %v363_v48 = vrot.slane %v362_v18, 1 }
 0x208   :  { %v364_v56 = vadd.f32 %v363_v48, %v362_v18 }
 0x20a   :  { %v365_v42 = vmul.f32 %v364_v56, %v364_v56 }
 0x20c   :  { %v367_v57 = vsel %vm366_vm1, %v365_v42, 0.0 }
 0x20d   :  { %368 = vadd.xlane.f32.xlu1 %v367_v57 }
 0x29a   :  { %v369_v19 = vpop.xlane.xlu1 %368 }
 0x29b   :  { %v370_v43 = vrot.slane %v369_v19, 4 }
 0x29d   :  { %v371_v24 = vadd.f32 %v370_v43, %v369_v19 }
 0x29f   :  { %v372_v38 = vrot.slane %v371_v24, 2 }
 0x2a1   :  { %v373_v22 = vadd.f32 %v372_v38, %v371_v24 }
 0x2a3   :  { %v374_v39 = vrot.slane %v373_v22, 1 }
 0x2a5   :  { %v375_v29 = vadd.f32 %v374_v39, %v373_v22 }
 0x2a7   :  { %474 = vpush %v375_v29 }
 0x2d8   :  { %s475_s4 = spop %474 }
 0x2d9   :  { %v377_v9 = vstv %s475_s4 }
 0x2da   :  { %v378_v23 = vadd.f32 1e-30, %v377_v9 }
 0x2dc   :  { %482 = vrsqrt.f32 %v378_v23 }
 0x2e6   :  { %v483_v31 = vpop.eup %482 }
 0x2e7   :  { %v380_v30 = vmul.f32 %v483_v31, %v364_v56 }
 0x2e9   :  { %v381_v26 = vmul.f32 %v380_v30, %v364_v56  ;;  %405 = vst [vmem:[#allocation3] sm:$0x1] %v380_v30 }
 0x2eb   :  { %v382_v27 = vsel %vm366_vm1, %v381_v26, 0.0 }
 0x2ec   :  { %383 = vadd.xlane.f32.xlu0 %v382_v27 }
 0x2ed   :  { %501 = shalt.err (!%p498_p4)
}
 0x2ee   :  { %s502_s19 = scalar_lea.hbm %s1311_s3, 16 }
 0x2ef   :  { %p503_p5 = scmp.ne.s32.totalorder %s1311_s3, %s502_s19  ;;  %p506_p6 = scmp.lt.u32.totalorder %s502_s19, %s1311_s3 }
 0x2f1   :  { %p508_p7 = pnand %p506_p6, %p503_p5 }
 0x2f3   :  { %511 = shalt.err (!%p508_p7)
}
 0x2f4   :  { %447 = dma.vmem_to_hbm [thread:$0]  %s445_s14, 16, %s1311_s3, [#allocation4]   ;;  %v393_v28 = vld [vmem:[#allocation2] sm:$0x1]  ;;  %vm403_vm2 = vcmask 0  }
 0x2f5   :  { %v471_v52 = vmul.f32 -1.442695, %v393_v28  ;;  %s539_s3 = smov [#allocation5]  }
 0x2f6   :  { %s456_s26 = sshll.u32 %s539_s3, 4  ;;  %s457_s26 = int_to_ptr.vmem [resolvable:$true] %s456_s26 }
 0x2f7   :  { %484 = vpow2.f32 %v471_v52  ;;  %s512_s27 = scalar_lea.vmem %s457_s26, 16  ;;  %s516_s28 = scalar_lea.vmem %s457_s26, 32 }
 0x2f8   :  { %p513_p8 = scmp.ne.s32.totalorder %s457_s26, %s512_s27  ;;  %p517_p9 = scmp.lt.s32.totalorder %s457_s26, %s457_s26 }
 0x2f9   :  { %p518_p10 = scmp.lt.s32.totalorder %s516_s28, %s512_s27 }
 0x2fb   :  { %p519_p11 = por %p518_p10, %p517_p9 }
 0x2fd   :  { %p520_p12 = pnand %p519_p11, %p513_p8 }
 0x301   :  { %v485_v53 = vpop.eup %484 }
 0x302   :  { %v397_v44 = vadd.f32 1.0, %v485_v53 }
 0x304   :  { %486 = vrcp.f32 %v397_v44 }
 0x30e   :  { %v487_v63 = vpop.eup %486 }
 0x30f   :  { %v400_v45 = vmul.f32 10.0, %v487_v63 }
 0x379   :  { %v384_v34 = vpop.xlane.xlu0 %383 }
 0x37a   :  { %v385_v35 = vrot.slane %v384_v34, 4 }
 0x37c   :  { %v386_v5 = vadd.f32 %v385_v35, %v384_v34 }
 0x37e   :  { %v387_v8 = vrot.slane %v386_v5, 2 }
 0x380   :  { %v388_v12 = vadd.f32 %v387_v8, %v386_v5 }
 0x382   :  { %v389_v13 = vrot.slane %v388_v12, 1 }
 0x384   :  { %v390_v25 = vadd.f32 %v389_v13, %v388_v12 }
 0x386   :  { %476 = vpush %v390_v25 }
 0x3b7   :  { %s477_s2 = spop %476 }
 0x3b8   :  { %v392_v62 = vstv %s477_s2 }
 0x3b9   :  { %488 = vrcp.f32 %v392_v62 }
 0x3c3   :  { %v489_v58 = vpop.eup %488 }
 0x3c4   :  { %v402_v59 = vmul.f32 %v489_v58, %v400_v45 }
 0x3c6   :  { %404 = vst.msk [vmem:[#allocation5] sm:$0x1] %vm403_vm2, %v402_v59 }
 0x3c7   :  { %523 = shalt.err (!%p520_p12)
}
 0x3c8   :  { %s524_s0 = scalar_lea.hbm %s1313_s5, 16 }
 0x3c9   :  { %p525_p13 = scmp.ne.s32.totalorder %s1313_s5, %s524_s0  ;;  %p528_p0 = scmp.lt.u32.totalorder %s524_s0, %s1313_s5 }
 0x3cb   :  { %p530_p1 = pnand %p528_p0, %p525_p13 }
 0x3cd   :  { %533 = shalt.err (!%p530_p1)
}
 0x3ce   :  { %459 = dma.vmem_to_hbm [thread:$0]  %s457_s26, 16, %s1313_s5, [#allocation6]  }
 0x3cf   :  { %534 = dma.done.wait [#allocation4], 16  }
 0x3d0   :  { %535 = vsyncadd [#allocation4], 4294967280 }
 0x3d1   :  { %536 = dma.done.wait [#allocation6], 16  }
 0x3d2   :  { %537 = vsyncadd [#allocation6], 4294967280 }
 0x3d3   :  { %468 = vsyncpa [#allocation4], 1 }
 0x3d4   :  { %469 = vsyncpa [#allocation6], 1 }

</bundles_post_ra>
